<compile_context>
chip_gen: v5e
topology: v5e:2x2
jax: 0.10.0
libtpu: 0.0.40
codegen_flags: <defaults>
</compile_context>

<pallas_src>
import functools

import jax
import jax.numpy as jnp
from jax.experimental import pallas as pl
from jax.experimental.pallas import tpu as pltpu


def _gelu(y):
    # Exact (erf-based) GELU, matching torch.nn.GELU() default.
    return 0.5 * y * (1.0 + jax.lax.erf(y * 0.7071067811865475))


def _layer_norm(y, gamma, beta):
    # Two-pass statistics (matches the reference; avoids E[y^2]-E[y]^2 cancellation).
    mu = jnp.mean(y, axis=-1, keepdims=True)
    yc = y - mu
    var = jnp.mean(yc * yc, axis=-1, keepdims=True)
    return yc * jax.lax.rsqrt(var + 1e-5) * gamma + beta


def _fused_kernel(x_ref, w1_ref, w2_ref, vec_ref, o_ref, h2_ref, *, d):
    # Packed per-channel vectors (f32): rows 0..5 = b1, g1, be1, b2, g2, be2.
    vecs = vec_ref[...]
    b1, g1, be1 = vecs[0:1, :], vecs[1:2, :], vecs[2:3, :]
    b2, g2, be2 = vecs[3:4, :], vecs[4:5, :], vecs[5:6, :]

    x = x_ref[...]                      # (TL, 8*D) compute dtype (bf16 by default)
    w1 = w1_ref[...]                    # (4*D, D)  folded stage-1 weight

    # Stage 1 (depthwise k=4,s=4 folded into the 1x1 conv).  The two lane halves
    # of each 8*D row are the receptive fields of stage-1 rows 2r and 2r+1
    # (static, 128-aligned lane slices -> no relayout).
    ha = _layer_norm(
        _gelu(jnp.dot(x[:, :4 * d], w1, preferred_element_type=jnp.float32) + b1),
        g1, be1)
    hb = _layer_norm(
        _gelu(jnp.dot(x[:, 4 * d:], w1, preferred_element_type=jnp.float32) + b1),
        g1, be1)

    # Stage 2 (depthwise k=2,s=2 folded).  K-merge: write ha / hb into the two
    # 128-lane halves of the (TL, 2D) scratch (lane-aligned stores) and run a
    # single K=2D matmul so the 256-deep MXU (v6e/v7x) is fully used.
    h2_ref[:, :d] = ha.astype(h2_ref.dtype)
    h2_ref[:, d:] = hb.astype(h2_ref.dtype)
    y = jnp.dot(h2_ref[...], w2_ref[...], preferred_element_type=jnp.float32) + b2
    y = _layer_norm(_gelu(y), g2, be2)

    # TODO(synk): nn.Dropout(0.1) omitted — identity in eval mode.
    o_ref[...] = y.astype(o_ref.dtype)


def _pick_tile_rows(n_rows, d, x_bytes, target=512, vmem_budget=8 * 1024 * 1024):
    """VMEM-budgeted row tile; ensures >=2 grid steps when there is enough work."""
    per_row = (2 * 8 * d * x_bytes      # double-buffered streamed input tile
               + 2 * d * 4              # double-buffered f32 output tile
               + 3 * d * 4              # f32 temporaries (ha, hb, y)
               + 2 * d * x_bytes)       # stage-2 K-merge scratch
    vmem_cap = max(8, vmem_budget // per_row)
    two_step_cap = -(-n_rows // 2)      # ceil(n_rows / 2): >=2 steps (v7x megacore)
    tl = min(target, vmem_cap, two_step_cap)
    return max(8, (tl // 8) * 8)


def _fold_stage(wdw, bdw, wpw, bpw):
    """Fold depthwise (k=s, stride=s, groups=D) + pointwise 1x1 into one matmul.

    wdw: (s, D) depthwise taps; bdw: (1, D); wpw: (D, D) [in, out]; bpw: (1, D).
    Returns W: (s*D, D) with W[t*D + c, co] = wdw[t, c] * wpw[c, co]
    and b: (1, D) = bdw @ wpw + bpw.
    """
    s, d = wdw.shape
    w = (wdw[:, :, None] * wpw[None, :, :]).reshape(s * d, d)
    b = bdw @ wpw + bpw
    return w, b


@functools.partial(jax.jit, static_argnames=("tile_rows", "compute_dtype"))
def sequence_alignment_forward(x, params, *, tile_rows=None,
                               compute_dtype=jnp.bfloat16):
    """x: [B, L, D] -> [B, L/8, D] (stage 1: /4, stage 2: /2), fully fused."""
    b, l, d = x.shape
    assert l % 8 == 0, "seq_len must be divisible by 8"
    assert d % 128 == 0, "embed_dim must be a multiple of 128 for this kernel"
    n_rows = b * l // 8

    # Free, row-major reshape: each final output row's receptive field
    # (8 consecutive input rows of length D) becomes one 8*D row; cast the
    # streamed data to the (bf16) compute dtype in the wrapper.
    x2 = x.reshape(n_rows, 8 * d).astype(compute_dtype)

    w1, b1 = _fold_stage(params["wdw0"], params["bdw0"],
                         params["wpw0"], params["bpw0"])       # (4D, D), (1, D)
    w2, b2 = _fold_stage(params["wdw1"], params["bdw1"],
                         params["wpw1"], params["bpw1"])       # (2D, D), (1, D)
    w1c = w1.astype(compute_dtype)
    w2c = w2.astype(compute_dtype)

    # Pack the six per-channel vectors into one (8, D) f32 operand.
    vec = jnp.concatenate(
        [b1, params["gamma0"], params["beta0"],
         b2, params["gamma1"], params["beta1"],
         jnp.zeros((2, d), jnp.float32)], axis=0)

    x_bytes = jnp.dtype(compute_dtype).itemsize
    out_bytes = jnp.dtype(x.dtype).itemsize
    tl = tile_rows if tile_rows is not None else _pick_tile_rows(n_rows, d, x_bytes)
    assert tl % 8 == 0, tl
    grid = (pl.cdiv(n_rows, tl),)       # ragged last block is masked by Pallas

    cost = pl.CostEstimate(
        flops=20 * d * d * n_rows,                       # 2x(4D,D) + 1x(2D,D) dots/row
        transcendentals=3 * d * n_rows,                  # 3 GELUs per output row
        bytes_accessed=(n_rows * 8 * d * x_bytes + n_rows * d * out_bytes
                        + 6 * d * d * x_bytes + 8 * d * 4),
    )

    full = lambda i: (0, 0)
    kernel = functools.partial(_fused_kernel, d=d)
    out = pl.pallas_call(
        kernel,
        out_shape=jax.ShapeDtypeStruct((n_rows, d), x.dtype),
        grid_spec=pltpu.PrefetchScalarGridSpec(
            num_scalar_prefetch=0,
            grid=grid,
            in_specs=[
                pl.BlockSpec((tl, 8 * d), lambda i: (i, 0)),   # streamed x row tile
                pl.BlockSpec((4 * d, d), full),                # stage-1 folded weight
                pl.BlockSpec((2 * d, d), full),                # stage-2 folded weight
                pl.BlockSpec((8, d), full),                    # packed bias/gamma/beta
            ],
            out_specs=pl.BlockSpec((tl, d), lambda i: (i, 0)),
            scratch_shapes=[pltpu.VMEM((tl, 2 * d), compute_dtype)],  # K-merge buffer
        ),
        compiler_params=pltpu.CompilerParams(
            dimension_semantics=("parallel",)),
        cost_estimate=cost,
    )(x2, w1c, w2c, vec)

    return out.reshape(b, l // 8, d)


def init_params(key, embed_dim):
    """Deterministic parameter init (PyTorch-like uniform(-1/sqrt(fan_in), +))."""
    ks = jax.random.split(key, 8)
    strides = (4, 2)
    params = {}

    def u(k, shape, fan_in):
        bound = 1.0 / (fan_in ** 0.5)
        return jax.random.uniform(k, shape, jnp.float32, -bound, bound)

    for i, s in enumerate(strides):
        # depthwise conv: torch weight (D, 1, k) -> stored here as (k, D)
        params[f"wdw{i}"] = u(ks[4 * i + 0], (s, embed_dim), s)
        params[f"bdw{i}"] = u(ks[4 * i + 1], (1, embed_dim), s)
        # pointwise conv: torch weight (D_out, D_in, 1) -> stored here as (D_in, D_out)
        params[f"wpw{i}"] = u(ks[4 * i + 2], (embed_dim, embed_dim), embed_dim)
        params[f"bpw{i}"] = u(ks[4 * i + 3], (1, embed_dim), embed_dim)
        params[f"gamma{i}"] = jnp.ones((1, embed_dim), jnp.float32)
        params[f"beta{i}"] = jnp.zeros((1, embed_dim), jnp.float32)
    return params


# ---------------------------- pure-JAX reference ----------------------------

def _ref_stage(x, wdw, bdw, wpw, bpw, g, be, stride):
    b, l, d = x.shape
    xr = x.reshape(b, l // stride, stride, d)
    dw = jnp.sum(xr * wdw[None, None], axis=2) + bdw[0]
    y = jnp.einsum("bld,de->ble", dw, wpw,
                   precision=jax.lax.Precision.HIGHEST) + bpw[0]
    y = 0.5 * y * (1.0 + jax.lax.erf(y * 0.7071067811865475))
    mu = y.mean(-1, keepdims=True)
    var = jnp.square(y - mu).mean(-1, keepdims=True)
    return (y - mu) / jnp.sqrt(var + 1e-5) * g[0] + be[0]


def _ref_forward(x, p):
    x = _ref_stage(x, p["wdw0"], p["bdw0"], p["wpw0"], p["bpw0"],
                   p["gamma0"], p["beta0"], 4)
    x = _ref_stage(x, p["wdw1"], p["bdw1"], p["wpw1"], p["bpw1"],
                   p["gamma1"], p["beta1"], 2)
    return x


if __name__ == "__main__":
    B, L, D = 2, 256, 128   # embed_dim=128, seq_len=256 -> output seq_len=32
    key = jax.random.PRNGKey(0)
    kx, kp = jax.random.split(key)
    x = jax.random.normal(kx, (B, L, D), jnp.float32)
    params = init_params(kp, D)

    out = jax.block_until_ready(sequence_alignment_forward(x, params))
    assert out.shape == (B, L // 8, D), out.shape
    ref = _ref_forward(x, params)
    # bf16 data path vs f32 reference -> bf16-level tolerance on O(1) LN outputs.
    err = float(jnp.max(jnp.abs(out - ref)))
    assert err < 5e-2, err

    # Exercise the cdiv grid / ragged-last-block path (n_rows = 51 not a
    # multiple of the auto-picked row tile).
    B2, L2 = 3, 136
    x2 = jax.random.normal(jax.random.PRNGKey(1), (B2, L2, D), jnp.float32)
    out2 = jax.block_until_ready(sequence_alignment_forward(x2, params))
    assert out2.shape == (B2, L2 // 8, D), out2.shape
    ref2 = _ref_forward(x2, params)
    err2 = float(jnp.max(jnp.abs(out2 - ref2)))
    assert err2 < 5e-2, err2

    print("KERNEL_OK")
</pallas_src>

<mosaic_0001>
module attributes {stable_mosaic.version = 11 : i64} {
  func.func @_fused_kernel(%arg0: i32, %arg1: memref<32x1024xbf16, #tpu.memory_space<vmem>>, %arg2: memref<512x128xbf16, #tpu.memory_space<vmem>>, %arg3: memref<256x128xbf16, #tpu.memory_space<vmem>>, %arg4: memref<8x128xf32, #tpu.memory_space<vmem>>, %arg5: memref<32x128xf32, #tpu.memory_space<vmem>>, %arg6: memref<32x256xbf16, #tpu.memory_space<vmem>>) attributes {dimension_semantics = [#tpu.dimension_semantics<parallel>], iteration_bounds = array<i64: 2>, scalar_prefetch = 0 : i64, scratch_operands = 1 : i64, tpu.core_type = #tpu.core_type<tc>, window_params = [{transform_indices = @transform_0, window_bounds = array<i64: 32, 1024>}, {pipeline_mode = #tpu.pipeline_mode<synchronous>, transform_indices = @transform_1, window_bounds = array<i64: 512, 128>}, {pipeline_mode = #tpu.pipeline_mode<synchronous>, transform_indices = @transform_2, window_bounds = array<i64: 256, 128>}, {pipeline_mode = #tpu.pipeline_mode<synchronous>, transform_indices = @transform_3, window_bounds = array<i64: 8, 128>}, {transform_indices = @transform_4, window_bounds = array<i64: 32, 128>}]} {
    %c0 = arith.constant 0 : index
    %c0_0 = arith.constant 0 : index
    %0 = vector.load %arg4[%c0, %c0_0] : memref<8x128xf32, #tpu.memory_space<vmem>>, vector<8x128xf32>
    %1 = vector.extract_strided_slice %0 {offsets = [0, 0], sizes = [1, 128], strides = [1, 1]} : vector<8x128xf32> to vector<1x128xf32>
    %2 = vector.extract_strided_slice %0 {offsets = [1, 0], sizes = [1, 128], strides = [1, 1]} : vector<8x128xf32> to vector<1x128xf32>
    %3 = vector.extract_strided_slice %0 {offsets = [2, 0], sizes = [1, 128], strides = [1, 1]} : vector<8x128xf32> to vector<1x128xf32>
    %4 = vector.extract_strided_slice %0 {offsets = [3, 0], sizes = [1, 128], strides = [1, 1]} : vector<8x128xf32> to vector<1x128xf32>
    %5 = vector.extract_strided_slice %0 {offsets = [4, 0], sizes = [1, 128], strides = [1, 1]} : vector<8x128xf32> to vector<1x128xf32>
    %6 = vector.extract_strided_slice %0 {offsets = [5, 0], sizes = [1, 128], strides = [1, 1]} : vector<8x128xf32> to vector<1x128xf32>
    %c0_1 = arith.constant 0 : index
    %c0_2 = arith.constant 0 : index
    %7 = vector.load %arg1[%c0_1, %c0_2] : memref<32x1024xbf16, #tpu.memory_space<vmem>>, vector<32x1024xbf16>
    %c0_3 = arith.constant 0 : index
    %c0_4 = arith.constant 0 : index
    %8 = vector.load %arg2[%c0_3, %c0_4] : memref<512x128xbf16, #tpu.memory_space<vmem>>, vector<512x128xbf16>
    %9 = vector.extract_strided_slice %7 {offsets = [0, 0], sizes = [32, 512], strides = [1, 1]} : vector<32x1024xbf16> to vector<32x512xbf16>
    %cst = arith.constant dense<0.000000e+00> : vector<32x128xf32>
    %10 = tpu.matmul %9, %8, %cst {dimension_numbers = #tpu.dot_dimension_numbers<[1], [0], [0], [1], [0, 0, 1, 1], [], []>} : vector<32x512xbf16>, vector<512x128xbf16>, vector<32x128xf32> -> vector<32x128xf32>
    %11 = vector.broadcast %1 : vector<1x128xf32> to vector<32x128xf32>
    %12 = arith.addf %10, %11 : vector<32x128xf32>
    %cst_5 = arith.constant 5.000000e-01 : f32
    %13 = vector.broadcast %cst_5 : f32 to vector<32x128xf32>
    %14 = arith.mulf %13, %12 : vector<32x128xf32>
    %cst_6 = arith.constant 0.707106769 : f32
    %15 = vector.broadcast %cst_6 : f32 to vector<32x128xf32>
    %16 = arith.mulf %12, %15 : vector<32x128xf32>
    %17 = math.erf %16 : vector<32x128xf32>
    %cst_7 = arith.constant 1.000000e+00 : f32
    %18 = vector.broadcast %cst_7 : f32 to vector<32x128xf32>
    %19 = arith.addf %18, %17 : vector<32x128xf32>
    %20 = arith.mulf %14, %19 : vector<32x128xf32>
    %cst_8 = arith.constant dense<0.000000e+00> : vector<32xf32>
    %21 = vector.multi_reduction <add>, %20, %cst_8 [1] : vector<32x128xf32> to vector<32xf32>
    %22 = vector.shape_cast %21 : vector<32xf32> to vector<32x1xf32>
    %cst_9 = arith.constant 1.280000e+02 : f32
    %23 = vector.broadcast %cst_9 : f32 to vector<32x1xf32>
    %24 = arith.divf %22, %23 : vector<32x1xf32>
    %25 = vector.broadcast %24 : vector<32x1xf32> to vector<32x128xf32>
    %26 = arith.subf %20, %25 : vector<32x128xf32>
    %27 = arith.mulf %26, %26 : vector<32x128xf32>
    %cst_10 = arith.constant dense<0.000000e+00> : vector<32xf32>
    %28 = vector.multi_reduction <add>, %27, %cst_10 [1] : vector<32x128xf32> to vector<32xf32>
    %29 = vector.shape_cast %28 : vector<32xf32> to vector<32x1xf32>
    %cst_11 = arith.constant 1.280000e+02 : f32
    %30 = vector.broadcast %cst_11 : f32 to vector<32x1xf32>
    %31 = arith.divf %29, %30 : vector<32x1xf32>
    %cst_12 = arith.constant 9.99999974E-6 : f32
    %32 = vector.broadcast %cst_12 : f32 to vector<32x1xf32>
    %33 = arith.addf %31, %32 : vector<32x1xf32>
    %34 = math.rsqrt %33 : vector<32x1xf32>
    %35 = vector.broadcast %34 : vector<32x1xf32> to vector<32x128xf32>
    %36 = arith.mulf %26, %35 : vector<32x128xf32>
    %37 = vector.broadcast %2 : vector<1x128xf32> to vector<32x128xf32>
    %38 = arith.mulf %36, %37 : vector<32x128xf32>
    %39 = vector.broadcast %3 : vector<1x128xf32> to vector<32x128xf32>
    %40 = arith.addf %38, %39 : vector<32x128xf32>
    %41 = vector.extract_strided_slice %7 {offsets = [0, 512], sizes = [32, 512], strides = [1, 1]} : vector<32x1024xbf16> to vector<32x512xbf16>
    %cst_13 = arith.constant dense<0.000000e+00> : vector<32x128xf32>
    %42 = tpu.matmul %41, %8, %cst_13 {dimension_numbers = #tpu.dot_dimension_numbers<[1], [0], [0], [1], [0, 0, 1, 1], [], []>} : vector<32x512xbf16>, vector<512x128xbf16>, vector<32x128xf32> -> vector<32x128xf32>
    %43 = vector.broadcast %1 : vector<1x128xf32> to vector<32x128xf32>
    %44 = arith.addf %42, %43 : vector<32x128xf32>
    %cst_14 = arith.constant 5.000000e-01 : f32
    %45 = vector.broadcast %cst_14 : f32 to vector<32x128xf32>
    %46 = arith.mulf %45, %44 : vector<32x128xf32>
    %cst_15 = arith.constant 0.707106769 : f32
    %47 = vector.broadcast %cst_15 : f32 to vector<32x128xf32>
    %48 = arith.mulf %44, %47 : vector<32x128xf32>
    %49 = math.erf %48 : vector<32x128xf32>
    %cst_16 = arith.constant 1.000000e+00 : f32
    %50 = vector.broadcast %cst_16 : f32 to vector<32x128xf32>
    %51 = arith.addf %50, %49 : vector<32x128xf32>
    %52 = arith.mulf %46, %51 : vector<32x128xf32>
    %cst_17 = arith.constant dense<0.000000e+00> : vector<32xf32>
    %53 = vector.multi_reduction <add>, %52, %cst_17 [1] : vector<32x128xf32> to vector<32xf32>
    %54 = vector.shape_cast %53 : vector<32xf32> to vector<32x1xf32>
    %cst_18 = arith.constant 1.280000e+02 : f32
    %55 = vector.broadcast %cst_18 : f32 to vector<32x1xf32>
    %56 = arith.divf %54, %55 : vector<32x1xf32>
    %57 = vector.broadcast %56 : vector<32x1xf32> to vector<32x128xf32>
    %58 = arith.subf %52, %57 : vector<32x128xf32>
    %59 = arith.mulf %58, %58 : vector<32x128xf32>
    %cst_19 = arith.constant dense<0.000000e+00> : vector<32xf32>
    %60 = vector.multi_reduction <add>, %59, %cst_19 [1] : vector<32x128xf32> to vector<32xf32>
    %61 = vector.shape_cast %60 : vector<32xf32> to vector<32x1xf32>
    %cst_20 = arith.constant 1.280000e+02 : f32
    %62 = vector.broadcast %cst_20 : f32 to vector<32x1xf32>
    %63 = arith.divf %61, %62 : vector<32x1xf32>
    %cst_21 = arith.constant 9.99999974E-6 : f32
    %64 = vector.broadcast %cst_21 : f32 to vector<32x1xf32>
    %65 = arith.addf %63, %64 : vector<32x1xf32>
    %66 = math.rsqrt %65 : vector<32x1xf32>
    %67 = vector.broadcast %66 : vector<32x1xf32> to vector<32x128xf32>
    %68 = arith.mulf %58, %67 : vector<32x128xf32>
    %69 = vector.broadcast %2 : vector<1x128xf32> to vector<32x128xf32>
    %70 = arith.mulf %68, %69 : vector<32x128xf32>
    %71 = vector.broadcast %3 : vector<1x128xf32> to vector<32x128xf32>
    %72 = arith.addf %70, %71 : vector<32x128xf32>
    %73 = arith.truncf %40 : vector<32x128xf32> to vector<32x128xbf16>
    %c0_22 = arith.constant 0 : index
    %c0_23 = arith.constant 0 : index
    %74 = vector.load %arg6[%c0_22, %c0_23] : memref<32x256xbf16, #tpu.memory_space<vmem>>, vector<32x128xbf16>
    tpu.vector_store %arg6[%c0_22, %c0_23], %73 {strides = array<i32>} : memref<32x256xbf16, #tpu.memory_space<vmem>>, vector<32x128xbf16>,
    %75 = arith.truncf %72 : vector<32x128xf32> to vector<32x128xbf16>
    %c0_24 = arith.constant 0 : index
    %c128 = arith.constant 128 : index
    %76 = vector.load %arg6[%c0_24, %c128] : memref<32x256xbf16, #tpu.memory_space<vmem>>, vector<32x128xbf16>
    tpu.vector_store %arg6[%c0_24, %c128], %75 {strides = array<i32>} : memref<32x256xbf16, #tpu.memory_space<vmem>>, vector<32x128xbf16>,
    %c0_25 = arith.constant 0 : index
    %c0_26 = arith.constant 0 : index
    %77 = vector.load %arg6[%c0_25, %c0_26] : memref<32x256xbf16, #tpu.memory_space<vmem>>, vector<32x256xbf16>
    %c0_27 = arith.constant 0 : index
    %c0_28 = arith.constant 0 : index
    %78 = vector.load %arg3[%c0_27, %c0_28] : memref<256x128xbf16, #tpu.memory_space<vmem>>, vector<256x128xbf16>
    %cst_29 = arith.constant dense<0.000000e+00> : vector<32x128xf32>
    %79 = tpu.matmul %77, %78, %cst_29 {dimension_numbers = #tpu.dot_dimension_numbers<[1], [0], [0], [1], [0, 0, 1, 1], [], []>} : vector<32x256xbf16>, vector<256x128xbf16>, vector<32x128xf32> -> vector<32x128xf32>
    %80 = vector.broadcast %4 : vector<1x128xf32> to vector<32x128xf32>
    %81 = arith.addf %79, %80 : vector<32x128xf32>
    %cst_30 = arith.constant 5.000000e-01 : f32
    %82 = vector.broadcast %cst_30 : f32 to vector<32x128xf32>
    %83 = arith.mulf %82, %81 : vector<32x128xf32>
    %cst_31 = arith.constant 0.707106769 : f32
    %84 = vector.broadcast %cst_31 : f32 to vector<32x128xf32>
    %85 = arith.mulf %81, %84 : vector<32x128xf32>
    %86 = math.erf %85 : vector<32x128xf32>
    %cst_32 = arith.constant 1.000000e+00 : f32
    %87 = vector.broadcast %cst_32 : f32 to vector<32x128xf32>
    %88 = arith.addf %87, %86 : vector<32x128xf32>
    %89 = arith.mulf %83, %88 : vector<32x128xf32>
    %cst_33 = arith.constant dense<0.000000e+00> : vector<32xf32>
    %90 = vector.multi_reduction <add>, %89, %cst_33 [1] : vector<32x128xf32> to vector<32xf32>
    %91 = vector.shape_cast %90 : vector<32xf32> to vector<32x1xf32>
    %cst_34 = arith.constant 1.280000e+02 : f32
    %92 = vector.broadcast %cst_34 : f32 to vector<32x1xf32>
    %93 = arith.divf %91, %92 : vector<32x1xf32>
    %94 = vector.broadcast %93 : vector<32x1xf32> to vector<32x128xf32>
    %95 = arith.subf %89, %94 : vector<32x128xf32>
    %96 = arith.mulf %95, %95 : vector<32x128xf32>
    %cst_35 = arith.constant dense<0.000000e+00> : vector<32xf32>
    %97 = vector.multi_reduction <add>, %96, %cst_35 [1] : vector<32x128xf32> to vector<32xf32>
    %98 = vector.shape_cast %97 : vector<32xf32> to vector<32x1xf32>
    %cst_36 = arith.constant 1.280000e+02 : f32
    %99 = vector.broadcast %cst_36 : f32 to vector<32x1xf32>
    %100 = arith.divf %98, %99 : vector<32x1xf32>
    %cst_37 = arith.constant 9.99999974E-6 : f32
    %101 = vector.broadcast %cst_37 : f32 to vector<32x1xf32>
    %102 = arith.addf %100, %101 : vector<32x1xf32>
    %103 = math.rsqrt %102 : vector<32x1xf32>
    %104 = vector.broadcast %103 : vector<32x1xf32> to vector<32x128xf32>
    %105 = arith.mulf %95, %104 : vector<32x128xf32>
    %106 = vector.broadcast %5 : vector<1x128xf32> to vector<32x128xf32>
    %107 = arith.mulf %105, %106 : vector<32x128xf32>
    %108 = vector.broadcast %6 : vector<1x128xf32> to vector<32x128xf32>
    %109 = arith.addf %107, %108 : vector<32x128xf32>
    %c0_38 = arith.constant 0 : index
    %c0_39 = arith.constant 0 : index
    %110 = vector.load %arg5[%c0_38, %c0_39] : memref<32x128xf32, #tpu.memory_space<vmem>>, vector<32x128xf32>
    tpu.vector_store %arg5[%c0_38, %c0_39], %109 {strides = array<i32>} : memref<32x128xf32, #tpu.memory_space<vmem>>, vector<32x128xf32>,
    return
  }
  func.func @transform_0(%arg0: i32) -> (i32, i32) {
    %c0_i32 = arith.constant 0 : i32
    %c0_i32_0 = arith.constant 0 : i32
    return %arg0, %c0_i32 : i32, i32
  }
  func.func @transform_1(%arg0: i32) -> (i32, i32) {
    %c0_i32 = arith.constant 0 : i32
    %c0_i32_0 = arith.constant 0 : i32
    %c0_i32_1 = arith.constant 0 : i32
    return %c0_i32, %c0_i32_0 : i32, i32
  }
  func.func @transform_2(%arg0: i32) -> (i32, i32) {
    %c0_i32 = arith.constant 0 : i32
    %c0_i32_0 = arith.constant 0 : i32
    %c0_i32_1 = arith.constant 0 : i32
    return %c0_i32, %c0_i32_0 : i32, i32
  }
  func.func @transform_3(%arg0: i32) -> (i32, i32) {
    %c0_i32 = arith.constant 0 : i32
    %c0_i32_0 = arith.constant 0 : i32
    %c0_i32_1 = arith.constant 0 : i32
    return %c0_i32, %c0_i32_0 : i32, i32
  }
  func.func @transform_4(%arg0: i32) -> (i32, i32) {
    %c0_i32 = arith.constant 0 : i32
    %c0_i32_0 = arith.constant 0 : i32
    return %arg0, %c0_i32 : i32, i32
  }
}

</mosaic_0001>

<bundles_post_ra>
// kernel: sequence_alignment_forward.1
= control target key start
LH: loop header
LB: loop body
LE: loop exit
PB: predicated region body
PF: predicated region fallthrough
CT: control target
= control target key end

     0   :  { %9 = vsyncpa [#allocation4], 0  ;;  %s3236_s0 = inlined_call_operand.vmem [shape: bf16[64,1024], index: 0, kind: input, shape index: {}]   ;;  %s3237_s1 = inlined_call_operand.vmem [shape: bf16[512,128], index: 1, kind: input, shape index: {}]   ;;  %s3238_s2 = inlined_call_operand.vmem [shape: bf16[256,128], index: 2, kind: input, shape index: {}]   ;;  %s3239_s3 = inlined_call_operand.vmem [shape: f32[8,128], index: 3, kind: input, shape index: {}]   ;;  %s3240_s4 = inlined_call_operand.hbm [shape: f32[64,128], index: 4, kind: output, shape index: {}]  }
   0x1   :  { %11 = vsyncpa [#allocation4 + $0x1], 0  ;;  %s2368_s15 = smov 0   ;;  %s2370_s16 = smov 0  }
   0x2   :  { %s2372_s17 = smov 0   ;;  %s2374_s18 = smov 0  }
   0x3 LB: > { %s2389_s19 = sadd.s32 4294967295, %s2338_s18   ;;  %s1800_s20 = sadd.s32 4294967294, %s2338_s18   ;;  %s2338_s18 = sphi %s2374_s18, %s3246_s18   ;;  %s2334_s17 = sphi %s2372_s17, %s3245_s17   ;;  %s2330_s16 = sphi %s2370_s16, %s3244_s16   ;;  %s2326_s15 = sphi %s2368_s15, %s3243_s15  }
   0x4   : > { %s2393_s21 = sadd.s32 1, %s2338_s18   ;;  %s113_s22 = sadd.s32 1, %s2334_s17 }
   0x5   : > { %s110_s23 = ssub.s32 %s2338_s18, %s2393_s21  ;;  %p123_p0 = scmp.ne.s32.totalorder %s2334_s17, %s2330_s16 }
   0x6   : > { %p111_p1 = scmp.eq.s32.totalorder %s110_s23, 0  ;;  %p124_p2 = scmp.eq.s32.totalorder %s2389_s19, 1 }
   0x7   : > { %p129_p3 = scmp.ne.s32.totalorder %s2330_s16, %s2326_s15  ;;  %p130_p4 = scmp.eq.s32.totalorder %s1800_s20, 1 }
   0x8   : > { %s2404_s24 = scalar_select %p111_p1, %s2334_s17, %s113_s22  }
   0x9   : > { %p2406_p5 = por %p124_p2, %p123_p0  ;;  %p2410_p6 = por %p130_p4, %p129_p3 }
   0xa   : > { %p1803_p7 = scmp.ge.s32.totalorder %s2338_s18, 1  ;;  %p167_p8 = scmp.lt.s32.totalorder %s2338_s18, 3 }
   0xc   : > { %p168_p9 = pnand %p1803_p7, %p167_p8 }
   0xd   : > { %s1805_s8 = sshll.u32 (!%p168_p9), %s2389_s19, 2  ;;  %s191_s5 = sand.u32 (!%p168_p9), 1, %s2330_s16  }
   0xe   : > { %171 = sbr.rel (%p168_p9) target bundleno = 1046 (0x416), region = 36  ;;  %p195_p10 = scmp.lt.s32.totalorder (!%p168_p9), %s1805_s8, 7 }
   0xf   : > { %s1804_s6 = sshll.u32 (!%p168_p9), %s191_s5, 5  ;;  %s1723_s13 = scalar_lea.sflag (!%p168_p9), [#allocation4], %s191_s5 }
  0x10   : > { %s2296_s27 = scalar_lea.hbm (!%p168_p9), %s3240_s4, 64 }
  0x13   : > { %v2419_v0 = vld [vmem:[%s3237_s1 + $0x38] sm:$0xff]  ;;  %v2441_v4 = vld [vmem:[%s3237_s1 + $0x30] sm:$0xff]  ;;  %v2465_v8 = vld [vmem:[%s3237_s1 + $0x28] sm:$0xff]  ;;  %s3248_s8 = smov (!%p195_p10, %s1805_s8), 7 }
  0x14   : > { %v2424_v1 = vld [vmem:[%s3237_s1 + $0x78] sm:$0xff]  ;;  %516 = vmatpush.bf16.msra.mxu0 %v2419_v0  ;;  %v2446_v5 = vld [vmem:[%s3237_s1 + $0x70] sm:$0xff]  ;;  %v2470_v9 = vld [vmem:[%s3237_s1 + $0x68] sm:$0xff]  ;;  %s2097_s23 = sshll.u32 %s3248_s8, 5  ;;  %s193_s8 = scalar_lea.vmem [#allocation3], %s1804_s6 }
  0x15   : > { %v2429_v2 = vld [vmem:[%s3237_s1 + $0xb8] sm:$0xff]  ;;  %535 = vmatpush.bf16.msra.mxu1 %v2424_v1  ;;  %v2453_v6 = vld [vmem:[%s3237_s1 + $0xb0] sm:$0xff]  ;;  %v2477_v10 = vld [vmem:[%s3237_s1 + $0xa8] sm:$0xff]  ;;  %s2572_s7 = scalar_lea.vmem %s3236_s0, %s2097_s23 }
  0x16   : > { %v2434_v3 = vld [vmem:[%s3237_s1 + $0xf8] sm:$0xff]  ;;  %554 = vmatpush.bf16.msra.mxu2 %v2429_v2  ;;  %v2458_v7 = vld [vmem:[%s3237_s1 + $0xf0] sm:$0xff]  ;;  %v2482_v11 = vld [vmem:[%s3237_s1 + $0xe8] sm:$0xff] }
  0x17   : > { %573 = vmatpush.bf16.msra.mxu3 %v2434_v3  ;;  %v2490_v12 = vld [vmem:[%s3237_s1 + $0x20] sm:$0xff]  ;;  %v2514_v16 = vld [vmem:[%s3237_s1 + $0x18] sm:$0xff]  ;;  %v2538_v20 = vld [vmem:[%s3237_s1 + $0x10] sm:$0xff] }
  0x18   : > { %517 = vmatpush.bf16.msra.mxu0 %v2441_v4  ;;  %v2495_v13 = vld [vmem:[%s3237_s1 + $0x60] sm:$0xff]  ;;  %v2519_v17 = vld [vmem:[%s3237_s1 + $0x58] sm:$0xff]  ;;  %v2543_v21 = vld [vmem:[%s3237_s1 + $0x50] sm:$0xff] }
  0x19   : > { %536 = vmatpush.bf16.msra.mxu1 %v2446_v5  ;;  %v2502_v14 = vld [vmem:[%s3237_s1 + $0xa0] sm:$0xff]  ;;  %v2526_v18 = vld [vmem:[%s3237_s1 + $0x98] sm:$0xff]  ;;  %v2550_v22 = vld [vmem:[%s3237_s1 + $0x90] sm:$0xff] }
  0x1a   : > { %555 = vmatpush.bf16.msra.mxu2 %v2453_v6  ;;  %v2507_v15 = vld [vmem:[%s3237_s1 + $0xe0] sm:$0xff]  ;;  %v2531_v19 = vld [vmem:[%s3237_s1 + $0xd8] sm:$0xff]  ;;  %v2555_v23 = vld [vmem:[%s3237_s1 + $0xd0] sm:$0xff] }
  0x1b   : > { %574 = vmatpush.bf16.msra.mxu3 %v2458_v7  ;;  %v2562_v24 = vld [vmem:[%s3237_s1 + $0x8] sm:$0xff]  ;;  %v2589_v28 = vld [vmem:[%s3237_s1] sm:$0xff]  ;;  %v1974_v56 = vld [vmem:[%s2572_s7 + $0x10] sm:$0xf] }
  0x1c   : > { %518 = vmatpush.bf16.msra.mxu0 %v2465_v8  ;;  %v2567_v25 = vld [vmem:[%s3237_s1 + $0x48] sm:$0xff]  ;;  %v2594_v29 = vld [vmem:[%s3237_s1 + $0x40] sm:$0xff]  ;;  %v2104_v57 = vld [vmem:[%s2572_s7 + $0x2c] sm:$0xf0] }
  0x1d   : > { %537 = vmatpush.bf16.msra.mxu1 %v2470_v9  ;;  %v2579_v26 = vld [vmem:[%s3237_s1 + $0x88] sm:$0xff]  ;;  %v2599_v30 = vld [vmem:[%s3237_s1 + $0x80] sm:$0xff]  ;;  %v2100_v58 = vld [vmem:[%s2572_s7 + $0x14] sm:$0xf] }
  0x1e   : > { %556 = vmatpush.bf16.msra.mxu2 %v2477_v10  ;;  %v2584_v27 = vld [vmem:[%s3237_s1 + $0xc8] sm:$0xff]  ;;  %v2604_v31 = vld [vmem:[%s3237_s1 + $0xc0] sm:$0xff]  ;;  %v1976_v59 = vld [vmem:[%s2572_s7 + $0x30] sm:$0xf0] }
  0x1f   : > { %575 = vmatpush.bf16.msra.mxu3 %v2482_v11  ;;  %v1810_v32 = vld [vmem:[%s2572_s7] sm:$0xf]  ;;  %v2098_v34 = vld [vmem:[%s2572_s7 + $0x4] sm:$0xf]  ;;  %v1818_v36 = vld [vmem:[%s2572_s7 + $0x8] sm:$0xf] }
  0x20   : > { %519 = vmatpush.bf16.msra.mxu0 %v2490_v12  ;;  %v2102_v33 = vld [vmem:[%s2572_s7 + $0x1c] sm:$0xf0]  ;;  %v1812_v35 = vld [vmem:[%s2572_s7 + $0x20] sm:$0xf0]  ;;  %v2103_v37 = vld [vmem:[%s2572_s7 + $0x24] sm:$0xf0] }
  0x21   : > { %538 = vmatpush.bf16.msra.mxu1 %v2495_v13  ;;  %v2099_v38 = vld [vmem:[%s2572_s7 + $0xc] sm:$0xf]  ;;  %v1811_v40 = vor.u32 %v2102_v33, %v1810_v32  ;;  %v1815_v41 = vor.u32 %v2098_v34, %v1812_v35  ;;  %v1819_v42 = vor.u32 %v2103_v37, %v1818_v36  ;;  %v1826_v44 = vld [vmem:[%s2572_s7 + $0x40] sm:$0xf]  ;;  %v2106_v46 = vld [vmem:[%s2572_s7 + $0x44] sm:$0xf] }
  0x22   : > { %557 = vmatpush.bf16.msra.mxu2 %v2502_v14  ;;  %v1820_v39 = vld [vmem:[%s2572_s7 + $0x28] sm:$0xf0]  ;;  %v2110_v45 = vld [vmem:[%s2572_s7 + $0x5c] sm:$0xf0]  ;;  %v1828_v47 = vld [vmem:[%s2572_s7 + $0x60] sm:$0xf0] }
  0x23   : > { %576 = vmatpush.bf16.msra.mxu3 %v2507_v15  ;;  %v1823_v43 = vor.u32 %v2099_v38, %v1820_v39  ;;  %v1834_v48 = vld [vmem:[%s2572_s7 + $0x48] sm:$0xf]  ;;  %v2107_v50 = vld [vmem:[%s2572_s7 + $0x4c] sm:$0xf]  ;;  %v1827_v52 = vor.u32 %v2110_v45, %v1826_v44  ;;  %v1831_v53 = vor.u32 %v2106_v46, %v1828_v47  ;;  %v1982_v60 = vld [vmem:[%s2572_s7 + $0x18] sm:$0xf] }
  0x24   : > { %520 = vmatpush.bf16.msra.mxu0 %v2514_v16  ;;  %v2111_v49 = vld [vmem:[%s2572_s7 + $0x64] sm:$0xf0]  ;;  %v1836_v51 = vld [vmem:[%s2572_s7 + $0x68] sm:$0xf0]  ;;  %v2105_v61 = vld [vmem:[%s2572_s7 + $0x34] sm:$0xf0] }
  0x25   : > { %539 = vmatpush.bf16.msra.mxu1 %v2519_v17  ;;  %v1835_v54 = vor.u32 %v2111_v49, %v1834_v48  ;;  %v1839_v55 = vor.u32 %v2107_v50, %v1836_v51  ;;  %v2101_v62 = vld [vmem:[%s2572_s7 + $0x1c] sm:$0xf] }
  0x26   : > { %558 = vmatpush.bf16.msra.mxu2 %v2526_v18  ;;  %v1984_v63 = vld [vmem:[%s2572_s7 + $0x38] sm:$0xf0] }
  0x27   : > { %577 = vmatpush.bf16.msra.mxu3 %v2531_v19 }
  0x28   : > { %521 = vmatpush.bf16.msra.mxu0 %v2538_v20 }
  0x29   : > { %540 = vmatpush.bf16.msra.mxu1 %v2543_v21 }
  0x2a   : > { %559 = vmatpush.bf16.msra.mxu2 %v2550_v22 }
  0x2b   : > { %578 = vmatpush.bf16.msra.mxu3 %v2555_v23 }
  0x2c   : > { %522 = vmatpush.bf16.msra.mxu0 %v2562_v24 }
  0x2d   : > { %541 = vmatpush.bf16.msra.mxu1 %v2567_v25 }
  0x2e   : > { %560 = vmatpush.bf16.msra.mxu2 %v2579_v26 }
  0x2f   : > { %579 = vmatpush.bf16.msra.mxu3 %v2584_v27 }
  0x30   : > { %523 = vmatpush.bf16.msra.mxu0 %v2589_v28 }
  0x31   : > { %542 = vmatpush.bf16.msra.mxu1 %v2594_v29 }
  0x32   : > { %561 = vmatpush.bf16.msra.mxu2 %v2599_v30 }
  0x33   : > { %580 = vmatpush.bf16.msra.mxu3 %v2604_v31  ;;  %524 = vmatmul.bf16.vlgmr.msra.gmra.mxu0 %v1811_v40 }
  0x34   : > { %905 = vmatpush.bf16.msrb.mxu0 %v2419_v0  ;;  %543 = vmatmul.bf16.vlgmr.msra.gmra.mxu1 %v1815_v41  ;;  %v1975_v0 = vor.u32 %v2104_v57, %v1974_v56 }
  0x35   : > { %562 = vmatmul.bf16.vlgmr.msra.gmra.mxu2 %v1819_v42  ;;  %924 = vmatpush.bf16.msrb.mxu1 %v2424_v1  ;;  %v1979_v1 = vor.u32 %v2100_v58, %v1976_v59 }
  0x36   : > { %943 = vmatpush.bf16.msrb.mxu2 %v2429_v2  ;;  %581 = vmatmul.bf16.vlgmr.msra.gmra.mxu3 %v1823_v43  ;;  %v1983_v2 = vor.u32 %v2105_v61, %v1982_v60 }
  0x37   : > { %962 = vmatpush.bf16.msrb.mxu3 %v2434_v3  ;;  %v1987_v3 = vor.u32 %v2101_v62, %v1984_v63 }
  0x38   : > { %906 = vmatpush.bf16.msrb.mxu0 %v2441_v4  ;;  %v1990_v4 = vld [vmem:[%s2572_s7 + $0x50] sm:$0xf] }
  0x39   : > { %925 = vmatpush.bf16.msrb.mxu1 %v2446_v5  ;;  %v2112_v5 = vld [vmem:[%s2572_s7 + $0x6c] sm:$0xf0] }
  0x3a   : > { %944 = vmatpush.bf16.msrb.mxu2 %v2453_v6  ;;  %v2108_v6 = vld [vmem:[%s2572_s7 + $0x54] sm:$0xf] }
  0x3b   : > { %963 = vmatpush.bf16.msrb.mxu3 %v2458_v7  ;;  %v1992_v7 = vld [vmem:[%s2572_s7 + $0x70] sm:$0xf0] }
  0x3c   : > { %907 = vmatpush.bf16.msrb.mxu0 %v2465_v8  ;;  %v1998_v8 = vld [vmem:[%s2572_s7 + $0x58] sm:$0xf] }
  0x3d   : > { %926 = vmatpush.bf16.msrb.mxu1 %v2470_v9  ;;  %v2113_v9 = vld [vmem:[%s2572_s7 + $0x74] sm:$0xf0] }
  0x3e   : > { %945 = vmatpush.bf16.msrb.mxu2 %v2477_v10  ;;  %v2109_v10 = vld [vmem:[%s2572_s7 + $0x5c] sm:$0xf] }
  0x3f   : > { %964 = vmatpush.bf16.msrb.mxu3 %v2482_v11  ;;  %v2000_v11 = vld [vmem:[%s2572_s7 + $0x78] sm:$0xf0]  ;;  %s2166_s7 = sshll.u32 %s2389_s19, 5  ;;  %s1735_s19 = sshll.u32 %s193_s8, 4  ;;  %s1736_s19 = int_to_ptr.vmem [resolvable:$true] %s1735_s19 }
  0x40   : > { %908 = vmatpush.bf16.msrb.mxu0 %v2490_v12  ;;  %v1991_v12 = vor.u32 %v2112_v5, %v1990_v4  ;;  %s1734_s11 = scalar_lea.hbm %s3240_s4, %s2166_s7 }
  0x41   : > { %927 = vmatpush.bf16.msrb.mxu1 %v2495_v13  ;;  %v1995_v13 = vor.u32 %v2108_v6, %v1992_v7  ;;  %s1737_s12 = sshll.u32 %s1734_s11, 4  ;;  %s1738_s12 = int_to_ptr.hbm [resolvable:$true] %s1737_s12 }
  0x42   : > { %946 = vmatpush.bf16.msrb.mxu2 %v2502_v14  ;;  %v1999_v14 = vor.u32 %v2113_v9, %v1998_v8  ;;  %s2290_s14 = sshra.s32 %s1738_s12, 4  ;;  %s2291_s14 = int_to_ptr.hbm [resolvable:$true] %s2290_s14 }
  0x43   : > { %965 = vmatpush.bf16.msrb.mxu3 %v2507_v15  ;;  %529 = vmatmul.bf16.gmra.mxu0 %v1827_v52  ;;  %v2003_v15 = vor.u32 %v2109_v10, %v2000_v11  ;;  %s2292_s20 = scalar_lea.hbm %s2291_s14, 32  ;;  %p2297_p0 = scmp.lt.s32.totalorder %s2291_s14, %s3240_s4 }
  0x44   : > { %909 = vmatpush.bf16.msrb.mxu0 %v2514_v16  ;;  %548 = vmatmul.bf16.gmra.mxu1 %v1831_v53  ;;  %v2681_v16 = vld [vmem:[%s3239_s3] sm:$0xff]  ;;  %p2293_p11 = scmp.ne.s32.totalorder %s2291_s14, %s2292_s20  ;;  %p2298_p1 = scmp.lt.s32.totalorder %s2296_s27, %s2292_s20 }
  0x45   : > { %567 = vmatmul.bf16.gmra.mxu2 %v1835_v54  ;;  %928 = vmatpush.bf16.msrb.mxu1 %v2519_v17  ;;  %v2684_v17 = vperm.slane %v2681_v16, 0 }
  0x46   : > { %947 = vmatpush.bf16.msrb.mxu2 %v2526_v18  ;;  %586 = vmatmul.bf16.gmra.mxu3 %v1839_v55  ;;  %p2294_p12 = pnand %p2293_p11, %p2406_p5  ;;  %p2299_p2 = por %p2298_p1, %p2297_p0 }
  0x47   : > { %966 = vmatpush.bf16.msrb.mxu3 %v2531_v19 }
  0x48   : > { %910 = vmatpush.bf16.msrb.mxu0 %v2538_v20  ;;  %p2295_p13 = pneg %p2294_p12 }
  0x49   : > { %929 = vmatpush.bf16.msrb.mxu1 %v2543_v21 }
  0x4a   : > { %948 = vmatpush.bf16.msrb.mxu2 %v2550_v22  ;;  %p2300_p3 = pnand %p2299_p2, %p2295_p13 }
  0x4b   : > { %967 = vmatpush.bf16.msrb.mxu3 %v2555_v23 }
  0x4c   : > { %911 = vmatpush.bf16.msrb.mxu0 %v2562_v24 }
  0x4d   : > { %930 = vmatpush.bf16.msrb.mxu1 %v2567_v25 }
  0x4e   : > { %949 = vmatpush.bf16.msrb.mxu2 %v2579_v26 }
  0x4f   : > { %968 = vmatpush.bf16.msrb.mxu3 %v2584_v27 }
  0x50   : > { %912 = vmatpush.bf16.msrb.mxu0 %v2589_v28 }
  0x51   : > { %931 = vmatpush.bf16.msrb.mxu1 %v2594_v29 }
  0x52   : > { %950 = vmatpush.bf16.msrb.mxu2 %v2599_v30 }
  0x53   : > { %969 = vmatpush.bf16.msrb.mxu3 %v2604_v31  ;;  %913 = vmatmul.bf16.vlgmr.msrb.gmra.mxu0 %v1975_v0 }
  0x54   : > { %932 = vmatmul.bf16.vlgmr.msrb.gmra.mxu1 %v1979_v1 }
  0x55   : > { %951 = vmatmul.bf16.vlgmr.msrb.gmra.mxu2 %v1983_v2 }
  0x56   : > { %970 = vmatmul.bf16.vlgmr.msrb.gmra.mxu3 %v1987_v3 }
  0x63   : > { %918 = vmatmul.bf16.gmra.mxu0 %v1991_v12 }
  0x64   : > { %937 = vmatmul.bf16.gmra.mxu1 %v1995_v13 }
  0x65   : > { %956 = vmatmul.bf16.gmra.mxu2 %v1999_v14 }
  0x66   : > { %975 = vmatmul.bf16.gmra.mxu3 %v2003_v15 }
  0xb0   : > { %v525_v18 = vpop.f32.mrf.mxu0 }
  0xb1   : > { %v544_v19 = vpop.f32.mrf.mxu1  ;;  %v526_v20 = vadd.f32 %v525_v18, %v2684_v17 }
  0xb3   : > { %v545_v21 = vadd.f32 %v544_v19, %v526_v20 }
  0xb8   : > { %v563_v22 = vpop.f32.mrf.mxu2  ;;  %v527_v25 = vpop.f32.mrf.mxu0 }
  0xb9   : > { %v582_v23 = vpop.f32.mrf.mxu3  ;;  %v564_v24 = vadd.f32 %v563_v22, %v545_v21  ;;  %v546_v26 = vpop.f32.mrf.mxu1  ;;  %v528_v28 = vadd.f32 %v527_v25, %v2684_v17 }
  0xbb   : > { %v2687_v27 = vadd.f32 %v582_v23, %v564_v24  ;;  %v547_v31 = vadd.f32 %v546_v26, %v528_v28 }
  0xbd   : > { %v2691_v29 = vmul.f32 0.70710677, %v2687_v27 }
  0xbf   : > { %v600_v30 = vmul.f32 %v2691_v29, %v2691_v29 }
  0xc0   : > { %v565_v32 = vpop.f32.mrf.mxu2  ;;  %v530_v36 = vpop.f32.mrf.mxu0 }
  0xc1   : > { %v584_v33 = vpop.f32.mrf.mxu3  ;;  %v2695_v34 = vmin.f32 %v600_v30, 16.0  ;;  %v566_v35 = vadd.f32 %v565_v32, %v547_v31  ;;  %v549_v37 = vpop.f32.mrf.mxu1  ;;  %v531_v38 = vadd.f32 %v530_v36, %v2684_v17 }
  0xc3   : > { %v602_v39 = vmul.f32 2.1237322e-06, %v2695_v34  ;;  %v2699_v40 = vadd.f32 %v584_v33, %v566_v35  ;;  %v613_v41 = vmul.f32 3.8918573e-05, %v2695_v34  ;;  %v550_v44 = vadd.f32 %v549_v37, %v531_v38 }
  0xc5   : > { %v603_v42 = vadd.f32 0.00028619796, %v602_v39  ;;  %v2703_v43 = vmul.f32 0.70710677, %v2699_v40  ;;  %v614_v45 = vadd.f32 0.001143296, %v613_v41 }
  0xc7   : > { %v604_v46 = vmul.f32 %v603_v42, %v2695_v34  ;;  %v640_v47 = vmul.f32 %v2703_v43, %v2703_v43  ;;  %v615_v50 = vmul.f32 %v614_v45, %v2695_v34 }
  0xc8   : > { %v568_v48 = vpop.f32.mrf.mxu2  ;;  %v532_v54 = vpop.f32.mrf.mxu0 }
  0xc9   : > { %v587_v49 = vpop.f32.mrf.mxu3  ;;  %v605_v51 = vadd.f32 0.0036580483, %v604_v46  ;;  %v2709_v52 = vmin.f32 %v640_v47, 16.0  ;;  %v569_v53 = vadd.f32 %v568_v48, %v550_v44  ;;  %v551_v55 = vpop.f32.mrf.mxu1  ;;  %v616_v56 = vadd.f32 0.014752088, %v615_v50 }
  0xca   : > { %v533_v59 = vadd.f32 %v532_v54, %v2684_v17 }
  0xcb   : > { %v642_v57 = vmul.f32 2.1237322e-06, %v2709_v52  ;;  %v2712_v58 = vadd.f32 %v587_v49, %v569_v53  ;;  %v653_v60 = vmul.f32 3.8918573e-05, %v2709_v52  ;;  %v617_v61 = vmul.f32 %v616_v56, %v2695_v34 }
  0xcc   : > { %v606_v62 = vmul.f32 %v605_v51, %v2695_v34  ;;  %v552_v4 = vadd.f32 %v551_v55, %v533_v59 }
  0xcd   : > { %v643_v63 = vadd.f32 0.00028619796, %v642_v57  ;;  %v2719_v0 = vmul.f32 0.70710677, %v2712_v58  ;;  %v618_v1 = vadd.f32 0.112945676, %v617_v61 }
  0xce   : > { %v654_v2 = vadd.f32 0.001143296, %v653_v60  ;;  %v607_v10 = vadd.f32 0.05243302, %v606_v62 }
  0xcf   : > { %v644_v3 = vmul.f32 %v643_v63, %v2709_v52  ;;  %v680_v5 = vmul.f32 %v2719_v0, %v2719_v0  ;;  %v619_v8 = vmul.f32 %v618_v1, %v2695_v34 }
  0xd0   : > { %v570_v6 = vpop.f32.mrf.mxu2  ;;  %v655_v9 = vmul.f32 %v654_v2, %v2709_v52  ;;  %v914_v13 = vpop.f32.mrf.mxu0  ;;  %v608_v26 = vmul.f32 %v607_v10, %v2695_v34 }
  0xd1   : > { %v589_v7 = vpop.f32.mrf.mxu3  ;;  %v645_v11 = vadd.f32 0.0036580483, %v644_v3  ;;  %v571_v12 = vadd.f32 %v570_v6, %v552_v4  ;;  %v2726_v14 = vmin.f32 %v680_v5, 16.0  ;;  %v915_v15 = vadd.f32 %v914_v13, %v2684_v17  ;;  %v933_v18 = vpop.f32.mrf.mxu1 }
  0xd2   : > { %v620_v19 = vadd.f32 0.4994258, %v619_v8  ;;  %v656_v20 = vadd.f32 0.014752088, %v655_v9  ;;  %v609_v38 = vadd.f32 0.18741608, %v608_v26 }
  0xd3   : > { %v646_v21 = vmul.f32 %v645_v11, %v2709_v52  ;;  %v2730_v22 = vadd.f32 %v589_v7, %v571_v12  ;;  %v682_v23 = vmul.f32 2.1237322e-06, %v2726_v14  ;;  %v934_v28 = vadd.f32 %v933_v18, %v915_v15 }
  0xd4   : > { %v621_v24 = vmul.f32 %v620_v19, %v2695_v34  ;;  %v657_v25 = vmul.f32 %v656_v20, %v2709_v52  ;;  %v693_v53 = vmul.f32 3.8918573e-05, %v2726_v14  ;;  %v610_v54 = vmul.f32 %v609_v38, %v2695_v34 }
  0xd5   : > { %v647_v30 = vadd.f32 0.05243302, %v646_v21  ;;  %v2737_v31 = vmul.f32 0.70710677, %v2730_v22  ;;  %v683_v35 = vadd.f32 0.00028619796, %v682_v23 }
  0xd6   : > { %v622_v32 = vadd.f32 1.0, %v621_v24  ;;  %v658_v33 = vadd.f32 0.112945676, %v657_v25  ;;  %v694_v4 = vadd.f32 0.001143296, %v693_v53 }
  0xd7   : > { %v720_v36 = vmul.f32 %v2737_v31, %v2737_v31  ;;  %v648_v44 = vmul.f32 %v647_v30, %v2709_v52  ;;  %v684_v49 = vmul.f32 %v683_v35, %v2726_v14  ;;  %v611_v34 = vadd.f32 1.1283791, %v610_v54 }
  0xd8   : > { %v952_v37 = vpop.f32.mrf.mxu2  ;;  %2225 = vrcp.f32 %v622_v32  ;;  %v916_v42 = vpop.f32.mrf.mxu0  ;;  %v659_v47 = vmul.f32 %v658_v33, %v2709_v52  ;;  %v632_v9 = vand.u32 2147483647, %v622_v32  ;;  %v634_v12 = vand.u32 2147483648, %v622_v32 }
  0xd9   : > { %v953_v39 = vadd.f32 %v952_v37, %v934_v28  ;;  %v971_v41 = vpop.f32.mrf.mxu3  ;;  %v2742_v45 = vmin.f32 %v720_v36, 16.0  ;;  %v935_v46 = vpop.f32.mrf.mxu1  ;;  %v649_v57 = vadd.f32 0.18741608, %v648_v44  ;;  %v917_v62 = vadd.f32 %v916_v42, %v2684_v17 }
  0xda   : > { %v660_v51 = vadd.f32 0.4994258, %v659_v47  ;;  %v685_v1 = vadd.f32 0.0036580483, %v684_v49  ;;  %vm628_vm1 = vweird.f32 %v622_v32  ;;  %v695_v21 = vmul.f32 %v694_v4, %v2726_v14 }
  0xdb   : > { %v2745_v48 = vadd.f32 %v971_v41, %v953_v39  ;;  %v722_v50 = vmul.f32 2.1237322e-06, %v2742_v45  ;;  %v650_v10 = vmul.f32 %v649_v57, %v2709_v52  ;;  %v936_v15 = vadd.f32 %v935_v46, %v917_v62 }
  0xdc   : > { %v661_v60 = vmul.f32 %v660_v51, %v2709_v52  ;;  %v686_v19 = vmul.f32 %v685_v1, %v2726_v14  ;;  %v635_v28 = vor.u32 1.1754944e-38, %v634_v12  ;;  %v612_v30 = vmul.f32 %v611_v34, %v2691_v29 }
  0xdd   : > { %v2752_v55 = vmul.f32 0.70710677, %v2745_v48  ;;  %v723_v59 = vadd.f32 0.00028619796, %v722_v50  ;;  %v651_v26 = vadd.f32 1.1283791, %v650_v10 }
  0xde   : > { %v2226_v56 = vpop.eup %2225  ;;  %v2758_v3 = vadd.f32 1.0, %v661_v60  ;;  %vm633_vm3 = vcmp.eq.f32.partialorder %v632_v9, 8.507059e+37  ;;  %v687_v37 = vadd.f32 0.05243302, %v686_v19  ;;  %v592_v50 = vmul.f32 0.5, %v2687_v27 }
  0xdf   : > { %v989_v61 = vmul.f32 %v2752_v55, %v2752_v55  ;;  %v624_v63 = vmul.f32 %v2226_v56, %v622_v32  ;;  %v724_v5 = vmul.f32 %v723_v59, %v2742_v45  ;;  %vm629_vm0 = vweird.f32 %v2226_v56 }
  0xe0   : > { %v954_v2 = vpop.f32.mrf.mxu2  ;;  %v919_v7 = vpop.f32.mrf.mxu0  ;;  %2227 = vrcp.f32 %v2758_v3  ;;  %vm630_vm2 = vmor %vm628_vm1, %vm629_vm0  ;;  %v696_v32 = vadd.f32 0.014752088, %v695_v21  ;;  %v652_v29 = vmul.f32 %v651_v26, %v2703_v43  ;;  %v733_v53 = vmul.f32 3.8918573e-05, %v2742_v45 }
  0xe1   : > { %v973_v6 = vpop.f32.mrf.mxu3  ;;  %v625_v8 = vsub.f32 1.0, %v624_v63  ;;  %v920_v11 = vadd.f32 %v919_v7, %v2684_v17  ;;  %v2764_v13 = vmin.f32 %v989_v61, 16.0  ;;  %v938_v20 = vpop.f32.mrf.mxu1  ;;  %v725_v23 = vadd.f32 0.0036580483, %v724_v5 }
  0xe2   : > { %v955_v24 = vadd.f32 %v954_v2, %v936_v15  ;;  %v688_v60 = vmul.f32 %v687_v37, %v2726_v14  ;;  %v672_v62 = vand.u32 2147483647, %v2758_v3  ;;  %v697_v63 = vmul.f32 %v696_v32, %v2726_v14 }
  0xe3   : > { %v626_v18 = vmul.f32 %v2226_v56, %v625_v8  ;;  %v939_v25 = vadd.f32 %v938_v20, %v920_v11  ;;  %v991_v33 = vmul.f32 2.1237322e-06, %v2764_v13  ;;  %v726_v41 = vmul.f32 %v725_v23, %v2742_v45 }
  0xe4   : > { %v2771_v42 = vadd.f32 %v973_v6, %v955_v24  ;;  %v674_v2 = vand.u32 2147483648, %v2758_v3  ;;  %v698_v5 = vadd.f32 0.112945676, %v697_v63  ;;  %v734_v9 = vadd.f32 0.001143296, %v733_v53 }
  0xe5   : > { %v627_v52 = vadd.f32 %v2226_v56, %v626_v18  ;;  %v992_v54 = vadd.f32 0.00028619796, %v991_v33  ;;  %v727_v27 = vadd.f32 0.05243302, %v726_v41  ;;  %vm668_vm5 = vweird.f32 %v2758_v3 }
  0xe6   : > { %v2228_v36 = vpop.eup %2227  ;;  %v2784_v43 = vmul.f32 0.70710677, %v2771_v42  ;;  %v699_v15 = vmul.f32 %v698_v5, %v2726_v14  ;;  %vm673_vm7 = vcmp.eq.f32.partialorder %v672_v62, 8.507059e+37  ;;  %v675_v19 = vor.u32 1.1754944e-38, %v674_v2 }
  0xe7   : > { %v631_v35 = vsel %vm630_vm2, %v2226_v56, %v627_v52  ;;  %v664_v51 = vmul.f32 %v2228_v36, %v2758_v3  ;;  %vm669_vm4 = vweird.f32 %v2228_v36  ;;  %v993_v6 = vmul.f32 %v992_v54, %v2764_v13 }
  0xe8   : > { %v957_v38 = vpop.f32.mrf.mxu2  ;;  %v636_v39 = vsel %vm633_vm3, %v635_v28, %v631_v35  ;;  %v921_v47 = vpop.f32.mrf.mxu0  ;;  %vm670_vm6 = vmor %vm668_vm5, %vm669_vm4  ;;  %v735_v20 = vmul.f32 %v734_v9, %v2742_v45  ;;  %v728_v21 = vmul.f32 %v727_v27, %v2742_v45  ;;  %v1029_v23 = vmul.f32 %v2784_v43, %v2784_v43 }
  0xe9   : > { %v958_v44 = vadd.f32 %v957_v38, %v939_v25  ;;  %v976_v46 = vpop.f32.mrf.mxu3  ;;  %v637_v49 = vmul.f32 %v636_v39, %v612_v30  ;;  %v922_v57 = vadd.f32 %v921_v47, %v2684_v17  ;;  %v665_v61 = vsub.f32 1.0, %v664_v51  ;;  %v940_v34 = vpop.f32.mrf.mxu1 }
  0xea   : > { %v700_v52 = vadd.f32 0.4994258, %v699_v15  ;;  %v994_v26 = vadd.f32 0.0036580483, %v993_v6  ;;  %v1002_v30 = vmul.f32 3.8918573e-05, %v2764_v13 }
  0xeb   : > { %v2777_v56 = vadd.f32 %v976_v46, %v958_v44  ;;  %v1968_v59 = vclamps-f32 %v637_v49, 1.0  ;;  %v666_v17 = vmul.f32 %v2228_v36, %v665_v61  ;;  %v941_v7 = vadd.f32 %v940_v34, %v922_v57 }
  0xec   : > { %v701_v37 = vmul.f32 %v700_v52, %v2726_v14  ;;  %v736_v38 = vadd.f32 0.014752088, %v735_v20  ;;  %v593_v39 = vmul.f32 0.5, %v2699_v40  ;;  %v689_v32 = vadd.f32 0.18741608, %v688_v60 }
  0xed   : > { %v760_v1 = vadd.f32 1.0, %v1968_v59  ;;  %v2788_v4 = vmul.f32 0.70710677, %v2777_v56  ;;  %v667_v12 = vadd.f32 %v2228_v36, %v666_v17  ;;  %v2809_v41 = vmin.f32 %v1029_v23, 16.0 }
  0xee   : > { %v2814_v46 = vadd.f32 1.0, %v701_v37  ;;  %v729_v47 = vadd.f32 0.18741608, %v728_v21  ;;  %v995_v49 = vmul.f32 %v994_v26, %v2764_v13  ;;  %v690_v54 = vmul.f32 %v689_v32, %v2726_v14 }
  0xef   : > { %v2791_v8 = vmul.f32 %v760_v1, %v592_v50  ;;  %v1069_v10 = vmul.f32 %v2788_v4, %v2788_v4  ;;  %v671_v25 = vsel %vm670_vm6, %v2228_v36, %v667_v12  ;;  %v737_v50 = vmul.f32 %v736_v38, %v2742_v45 }
  0xf0   : > { %v959_v11 = vpop.f32.mrf.mxu2  ;;  %v676_v28 = vsel %vm673_vm7, %v675_v19, %v671_v25  ;;  %2229 = vrcp.f32 %v2814_v46  ;;  %v1031_v57 = vmul.f32 2.1237322e-06, %v2809_v41  ;;  %v730_v62 = vmul.f32 %v729_v47, %v2742_v45 }
  0xf1   : > { %v960_v18 = vadd.f32 %v959_v11, %v941_v7  ;;  %768 = vadd.xlane.f32.xlu2 %v2791_v8  ;;  %v978_v24 = vpop.f32.mrf.mxu3  ;;  %v2805_v33 = vmin.f32 %v1069_v10, 16.0  ;;  %v677_v35 = vmul.f32 %v676_v28, %v652_v29  ;;  %v1003_v29 = vadd.f32 0.001143296, %v1002_v30 }
  0xf2   : > { %v738_v61 = vadd.f32 0.112945676, %v737_v50  ;;  %v996_v63 = vadd.f32 0.05243302, %v995_v49  ;;  %v691_v7 = vadd.f32 1.1283791, %v690_v54  ;;  %vm708_vm9 = vweird.f32 %v2814_v46 }
  0xf3   : > { %v2802_v3 = vadd.f32 %v978_v24, %v960_v18  ;;  %v1969_v44 = vclamps-f32 %v677_v35, 1.0  ;;  %v1071_v51 = vmul.f32 2.1237322e-06, %v2805_v33  ;;  %v1004_v27 = vmul.f32 %v1003_v29, %v2764_v13 }
  0xf4   : > { %v739_v34 = vmul.f32 %v738_v61, %v2742_v45  ;;  %v1082_v14 = vmul.f32 3.8918573e-05, %v2805_v33  ;;  %v1032_v9 = vadd.f32 0.00028619796, %v1031_v57  ;;  %v731_v11 = vadd.f32 1.1283791, %v730_v62 }
  0xf5   : > { %v2812_v36 = vmul.f32 0.70710677, %v2802_v3  ;;  %v761_v53 = vadd.f32 1.0, %v1969_v44  ;;  %v1072_v1 = vadd.f32 0.00028619796, %v1071_v51  ;;  %v997_v12 = vmul.f32 %v996_v63, %v2764_v13 }
  0xf6   : > { %v1005_v17 = vadd.f32 0.014752088, %v1004_v27  ;;  %v2230_v6 = vpop.eup %2229  ;;  %v740_v10 = vadd.f32 0.4994258, %v739_v34  ;;  %v1083_v23 = vadd.f32 0.001143296, %v1082_v14  ;;  %v1033_v26 = vmul.f32 %v1032_v9, %v2809_v41 }
  0xf7   : > { %v1109_v40 = vmul.f32 %v2812_v36, %v2812_v36  ;;  %v2826_v60 = vmul.f32 %v761_v53, %v593_v39  ;;  %v704_v15 = vmul.f32 %v2230_v6, %v2814_v46  ;;  %v1073_v19 = vmul.f32 %v1072_v1, %v2805_v33 }
  0xf8   : > { %v1006_v18 = vmul.f32 %v1005_v17, %v2764_v13  ;;  %v741_v21 = vmul.f32 %v740_v10, %v2742_v45  ;;  %v714_v28 = vand.u32 2147483648, %v2814_v46  ;;  %v1084_v35 = vmul.f32 %v1083_v23, %v2805_v33 }
  0xf9   : > { %v2824_v59 = vmin.f32 %v1109_v40, 16.0  ;;  %770 = vadd.xlane.f32.xlu2 %v2826_v60  ;;  %v705_v24 = vsub.f32 1.0, %v704_v15  ;;  %vm709_vm8 = vweird.f32 %v2230_v6  ;;  %v712_v38 = vand.u32 2147483647, %v2814_v46 }
  0xfa   : > { %v1007_v25 = vadd.f32 0.112945676, %v1006_v18  ;;  %v2842_v30 = vadd.f32 1.0, %v741_v21  ;;  %v998_v32 = vadd.f32 0.18741608, %v997_v12  ;;  %v692_v29 = vmul.f32 %v691_v7, %v2719_v0  ;;  %vm710_vm10 = vmor %vm708_vm9, %vm709_vm8 }
  0xfb   : > { %v1111_v2 = vmul.f32 2.1237322e-06, %v2824_v59  ;;  %v1122_v5 = vmul.f32 3.8918573e-05, %v2824_v59  ;;  %v706_v37 = vmul.f32 %v2230_v6, %v705_v24  ;;  %v1074_v45 = vadd.f32 0.0036580483, %v1073_v19 }
  0xfc   : > { %v1008_v39 = vmul.f32 %v1007_v25, %v2764_v13  ;;  %2231 = vrcp.f32 %v2842_v30  ;;  %v715_v51 = vor.u32 1.1754944e-38, %v714_v28  ;;  %v1085_v40 = vadd.f32 0.014752088, %v1084_v35 }
  0xfd   : > { %v1112_v20 = vadd.f32 0.00028619796, %v1111_v2  ;;  %v1123_v52 = vadd.f32 0.001143296, %v1122_v5  ;;  %v707_v47 = vadd.f32 %v2230_v6, %v706_v37  ;;  %v1042_v53 = vmul.f32 3.8918573e-05, %v2809_v41 }
  0xfe   : > { %v1009_v49 = vadd.f32 0.4994258, %v1008_v39  ;;  %v1034_v54 = vadd.f32 0.0036580483, %v1033_v26  ;;  %vm713_vm11 = vcmp.eq.f32.partialorder %v712_v38, 8.507059e+37  ;;  %v1075_v62 = vmul.f32 %v1074_v45, %v2805_v33 }
  0xff   : > { %v1113_v44 = vmul.f32 %v1112_v20, %v2824_v59  ;;  %v1124_v50 = vmul.f32 %v1123_v52, %v2824_v59  ;;  %v711_v57 = vsel %vm710_vm10, %v2230_v6, %v707_v47  ;;  %v1086_v46 = vmul.f32 %v1085_v40, %v2805_v33 }
 0x100   : > { %v1010_v61 = vmul.f32 %v1009_v49, %v2764_v13  ;;  %v716_v27 = vsel %vm713_vm11, %v715_v51, %v711_v57  ;;  %v594_v14 = vmul.f32 0.5, %v2712_v58  ;;  %v1043_v5 = vadd.f32 0.001143296, %v1042_v53 }
 0x101   : > { %v1114_v63 = vadd.f32 0.0036580483, %v1113_v44  ;;  %v717_v1 = vmul.f32 %v716_v27, %v692_v29  ;;  %v1125_v0 = vadd.f32 0.014752088, %v1124_v50  ;;  %v1087_v17 = vadd.f32 0.112945676, %v1086_v46 }
 0x102   : > { %v2856_v2 = vadd.f32 1.0, %v1010_v61  ;;  %v2232_v34 = vpop.eup %2231  ;;  %v732_v6 = vmul.f32 %v731_v11, %v2737_v31  ;;  %v999_v10 = vmul.f32 %v998_v32, %v2764_v13  ;;  %v1035_v12 = vmul.f32 %v1034_v54, %v2809_v41 }
 0x103   : > { %v1970_v7 = vclamps-f32 %v717_v1, 1.0  ;;  %v744_v9 = vmul.f32 %v2232_v34, %v2842_v30  ;;  %v1076_v15 = vadd.f32 0.05243302, %v1075_v62  ;;  %v1115_v18 = vmul.f32 %v1114_v63, %v2824_v59 }
 0x104   : > { %2233 = vrcp.f32 %v2856_v2  ;;  %v1088_v58 = vmul.f32 %v1087_v17, %v2805_v33  ;;  %v1126_v21 = vmul.f32 %v1125_v0, %v2824_v59  ;;  %vm749_vm12 = vweird.f32 %v2232_v34 }
 0x105   : > { %v762_v19 = vadd.f32 1.0, %v1970_v7  ;;  %v745_v20 = vsub.f32 1.0, %v744_v9  ;;  %v752_v31 = vand.u32 2147483647, %v2842_v30  ;;  %v754_v11 = vand.u32 2147483648, %v2842_v30 }
 0x106   : > { %v1044_v23 = vmul.f32 %v1043_v5, %v2809_v41  ;;  %v1089_v25 = vadd.f32 0.4994258, %v1088_v58  ;;  %v1127_v52 = vadd.f32 0.112945676, %v1126_v21  ;;  %v1000_v26 = vadd.f32 1.1283791, %v999_v10 }
 0x107   : > { %v2870_v24 = vmul.f32 %v762_v19, %v594_v14  ;;  %v746_v13 = vmul.f32 %v2232_v34, %v745_v20  ;;  %v1036_v28 = vadd.f32 0.05243302, %v1035_v12  ;;  %v1077_v35 = vmul.f32 %v1076_v15, %v2805_v33 }
 0x108   : > { %v1045_v37 = vadd.f32 0.014752088, %v1044_v23  ;;  %vm748_vm13 = vweird.f32 %v2842_v30  ;;  %v1090_v32 = vmul.f32 %v1089_v25, %v2805_v33  ;;  %v1128_v45 = vmul.f32 %v1127_v52, %v2824_v59 }
 0x109   : > { %772 = vadd.xlane.f32.xlu0 %v2870_v24  ;;  %v747_v39 = vadd.f32 %v2232_v34, %v746_v13  ;;  %v1116_v44 = vadd.f32 0.05243302, %v1115_v18  ;;  %vm750_vm14 = vmor %vm748_vm13, %vm749_vm12  ;;  %v755_v47 = vor.u32 1.1754944e-38, %v754_v11  ;;  %vm753_vm15 = vcmp.eq.f32.partialorder %v752_v31, 8.507059e+37 }
 0x10a   : > { %v2234_v38 = vpop.eup %2233  ;;  %v1046_v50 = vmul.f32 %v1045_v37, %v2809_v41  ;;  %v2880_v51 = vadd.f32 1.0, %v1090_v32  ;;  %v1129_v40 = vadd.f32 0.4994258, %v1128_v45  ;;  %v1078_v53 = vadd.f32 0.18741608, %v1077_v35 }
 0x10b   : > { %v1013_v49 = vmul.f32 %v2234_v38, %v2856_v2  ;;  %v751_v29 = vsel %vm750_vm14, %v2232_v34, %v747_v39  ;;  %v1021_v62 = vand.u32 2147483647, %v2856_v2  ;;  %v1023_v63 = vand.u32 2147483648, %v2856_v2 }
 0x10c   : > { %v756_v54 = vsel %vm753_vm15, %v755_v47, %v751_v29  ;;  %v1047_v57 = vadd.f32 0.112945676, %v1046_v50  ;;  %2235 = vrcp.f32 %v2880_v51  ;;  %vm1018_vm0 = vweird.f32 %v2234_v38 }
 0x10d   : > { %v1014_v30 = vsub.f32 1.0, %v1013_v49  ;;  %v757_v61 = vmul.f32 %v756_v54, %v732_v6  ;;  %v1130_v46 = vmul.f32 %v1129_v40, %v2824_v59  ;;  %v595_v0 = vmul.f32 0.5, %v2730_v22 }
 0x10e   : > { %v1048_v1 = vmul.f32 %v1047_v57, %v2809_v41  ;;  %v1117_v34 = vmul.f32 %v1116_v44, %v2824_v59  ;;  %vm1017_vm1 = vweird.f32 %v2856_v2  ;;  %v1001_v7 = vmul.f32 %v1000_v26, %v2752_v55 }
 0x10f   : > { %v1015_v27 = vmul.f32 %v2234_v38, %v1014_v30  ;;  %v1971_v14 = vclamps-f32 %v757_v61, 1.0  ;;  %v2890_v5 = vadd.f32 1.0, %v1130_v46  ;;  %v1037_v9 = vmul.f32 %v1036_v28, %v2809_v41  ;;  %vm1019_vm2 = vmor %vm1017_vm1, %vm1018_vm0 }
 0x110   : > { %v1049_v6 = vadd.f32 0.4994258, %v1048_v1  ;;  %v1024_v12 = vor.u32 1.1754944e-38, %v1023_v63  ;;  %v1079_v15 = vmul.f32 %v1078_v53, %v2805_v33  ;;  %vm1022_vm3 = vcmp.eq.f32.partialorder %v1021_v62, 8.507059e+37 }
 0x111   : > { %v1016_v17 = vadd.f32 %v2234_v38, %v1015_v27  ;;  %v763_v10 = vadd.f32 1.0, %v1971_v14  ;;  %2237 = vrcp.f32 %v2890_v5  ;;  %v1118_v19 = vadd.f32 0.18741608, %v1117_v34 }
 0x112   : > { %v2236_v22 = vpop.eup %2235  ;;  %v1050_v58 = vmul.f32 %v1049_v6, %v2809_v41  ;;  %v981_v33 = vmul.f32 0.5, %v2745_v48  ;;  %v1038_v11 = vadd.f32 0.18741608, %v1037_v9  ;;  %v1080_v25 = vadd.f32 1.1283791, %v1079_v15 }
 0x113   : > { %v1020_v18 = vsel %vm1019_vm2, %v2234_v38, %v1016_v17  ;;  %v2896_v20 = vmul.f32 %v763_v10, %v595_v0  ;;  %v1093_v55 = vmul.f32 %v2236_v22, %v2880_v51  ;;  %v1119_v52 = vmul.f32 %v1118_v19, %v2824_v59 }
 0x114   : > { %v1025_v2 = vsel %vm1022_vm3, %v1024_v12, %v1020_v18  ;;  %v2901_v31 = vadd.f32 1.0, %v1050_v58  ;;  %v1103_v26 = vand.u32 2147483648, %v2880_v51  ;;  %vm1098_vm4 = vweird.f32 %v2236_v22 }
 0x115   : > { %v1026_v21 = vmul.f32 %v1025_v2, %v1001_v7  ;;  %774 = vadd.xlane.f32.xlu0 %v2896_v20  ;;  %v1094_v13 = vsub.f32 1.0, %v1093_v55  ;;  %v1101_v38 = vand.u32 2147483647, %v2880_v51  ;;  %vm1097_vm5 = vweird.f32 %v2880_v51 }
 0x116   : > { %2239 = vrcp.f32 %v2901_v31  ;;  %v1039_v45 = vmul.f32 %v1038_v11, %v2809_v41  ;;  %v1081_v59 = vmul.f32 %v1080_v25, %v2788_v4  ;;  %vm1099_vm6 = vmor %vm1097_vm5, %vm1098_vm4  ;;  %v1104_v44 = vor.u32 1.1754944e-38, %v1103_v26 }
 0x117   : > { %v2004_v23 = vclamps-f32 %v1026_v21, 1.0  ;;  %v2238_v28 = vpop.eup %2237  ;;  %v1095_v37 = vmul.f32 %v2236_v22, %v1094_v13  ;;  %v1120_v49 = vadd.f32 1.1283791, %v1119_v52  ;;  %vm1102_vm7 = vcmp.eq.f32.partialorder %v1101_v38, 8.507059e+37 }
 0x118   : > { %v1133_v39 = vmul.f32 %v2238_v28, %v2890_v5  ;;  %v1143_v29 = vand.u32 2147483648, %v2890_v5  ;;  %vm1138_vm8 = vweird.f32 %v2238_v28  ;;  %v1141_v51 = vand.u32 2147483647, %v2890_v5 }
 0x119   : > { %v1149_v35 = vadd.f32 1.0, %v2004_v23  ;;  %v1096_v48 = vadd.f32 %v2236_v22, %v1095_v37  ;;  %v1040_v4 = vadd.f32 1.1283791, %v1039_v45  ;;  %v983_v57 = vmul.f32 0.5, %v2777_v56 }
 0x11a   : > { %v1134_v47 = vsub.f32 1.0, %v1133_v39  ;;  %vm1137_vm9 = vweird.f32 %v2890_v5  ;;  %v1121_v62 = vmul.f32 %v1120_v49, %v2812_v36  ;;  %v1144_v27 = vor.u32 1.1754944e-38, %v1143_v29 }
 0x11b   : > { %v2909_v32 = vmul.f32 %v1149_v35, %v981_v33  ;;  %v1100_v50 = vsel %vm1099_vm6, %v2236_v22, %v1096_v48  ;;  %vm1139_vm10 = vmor %vm1137_vm9, %vm1138_vm8  ;;  %vm1142_vm11 = vcmp.eq.f32.partialorder %v1141_v51, 8.507059e+37  ;;  %v1061_v0 = vand.u32 2147483647, %v2901_v31 }
 0x11c   : > { %v2240_v40 = vpop.eup %2239  ;;  %v1105_v53 = vsel %vm1102_vm7, %v1104_v44, %v1100_v50  ;;  %v1135_v54 = vmul.f32 %v2238_v28, %v1134_v47  ;;  %v1063_v34 = vand.u32 2147483648, %v2901_v31  ;;  %vm1057_vm13 = vweird.f32 %v2901_v31 }
 0x11d   : > { %1157 = vadd.xlane.f32.xlu0 %v2909_v32  ;;  %v1106_v30 = vmul.f32 %v1105_v53, %v1081_v59  ;;  %v1053_v41 = vmul.f32 %v2240_v40, %v2901_v31  ;;  %vm1058_vm12 = vweird.f32 %v2240_v40  ;;  %v1041_v10 = vmul.f32 %v1040_v4, %v2784_v43 }
 0x11e   : > { %v1136_v61 = vadd.f32 %v2238_v28, %v1135_v54  ;;  %vm1059_vm14 = vmor %vm1057_vm13, %vm1058_vm12  ;;  %v1064_v5 = vor.u32 1.1754944e-38, %v1063_v34  ;;  %vm1062_vm15 = vcmp.eq.f32.partialorder %v1061_v0, 8.507059e+37  ;;  %v984_v22 = vmul.f32 0.5, %v2802_v3 }
 0x11f   : > { %v2006_v63 = vclamps-f32 %v1106_v30, 1.0  ;;  %v1054_v46 = vsub.f32 1.0, %v1053_v41  ;;  %v982_v55 = vmul.f32 0.5, %v2771_v42  ;;  %v2340_v33 = vmov 128.0  }
 0x120   : > { %v1140_v1 = vsel %vm1139_vm10, %v2238_v28, %v1136_v61  ;;  %2241 = vrcp.f32 %v2340_v33 }
 0x121   : > { %v1151_v14 = vadd.f32 1.0, %v2006_v63  ;;  %v1145_v17 = vsel %vm1142_vm11, %v1144_v27, %v1140_v1  ;;  %v1055_v6 = vmul.f32 %v2240_v40, %v1054_v46 }
 0x122   : > { %v1146_v56 = vmul.f32 %v1145_v17, %v1121_v62 }
 0x123   : > { %v1155_v7 = vmul.f32 %v1151_v14, %v983_v57  ;;  %v1056_v9 = vadd.f32 %v2240_v40, %v1055_v6 }
 0x124   : > { %v2007_v36 = vclamps-f32 %v1146_v56, 1.0 }
 0x125   : > { %1161 = vadd.xlane.f32.xlu1 %v1155_v7  ;;  %v1060_v12 = vsel %vm1059_vm14, %v2240_v40, %v1056_v9 }
 0x126   : > { %v1152_v15 = vadd.f32 1.0, %v2007_v36  ;;  %v1065_v18 = vsel %vm1062_vm15, %v1064_v5, %v1060_v12  ;;  %v2242_v11 = vpop.eup %2241  ;;  %v2975_v36 = vperm.slane %v2681_v16, 2 }
 0x127   : > { %v1066_v19 = vmul.f32 %v1065_v18, %v1041_v10  ;;  %v777_v43 = vmul.f32 128.0, %v2242_v11  ;;  %vm781_vm0 = vweird.f32 %v2242_v11  ;;  %v2157_v18 = vld [vmem:[%s3238_s2 + $0x38] sm:$0xff] }
 0x128   : > { %v1156_v2 = vmul.f32 %v1152_v15, %v984_v22  ;;  %2167 = vmatpush.bf16.msra.mxu2 %v2157_v18  ;;  %1414 = vmatpush.bf16.msra.mxu0 %v2157_v18 }
 0x129   : > { %v2005_v58 = vclamps-f32 %v1066_v19, 1.0  ;;  %v778_v23 = vsub.f32 1.0, %v777_v43 }
 0x12b   : > { %v1150_v21 = vadd.f32 1.0, %v2005_v58  ;;  %v779_v13 = vmul.f32 %v2242_v11, %v778_v23  ;;  %v2155_v58 = vld [vmem:[%s3238_s2 + $0x28] sm:$0xff] }
 0x12d   : > { %1163 = vadd.xlane.f32.xlu1 %v1156_v2  ;;  %v1154_v31 = vmul.f32 %v1150_v21, %v982_v55  ;;  %v780_v25 = vadd.f32 %v2242_v11, %v779_v13  ;;  %v2154_v55 = vld [vmem:[%s3238_s2 + $0x20] sm:$0xff]  ;;  %v2153_v13 = vld [vmem:[%s3238_s2 + $0x18] sm:$0xff] }
 0x12f   : > { %v2927_v52 = vsel %vm781_vm0, %v2242_v11, %v780_v25 }
 0x135   : > { %1159 = vadd.xlane.f32.xlu1 %v1154_v31 }
 0x164   : > { %v769_v3 = vpop.xlane.xlu2 %768 }
 0x165   : > { %v783_v26 = vmul.f32 %v2927_v52, %v769_v3 }
 0x167   : > { %v787_v28 = vsub.f32 %v2791_v8, %v783_v26  ;;  %v2152_v26 = vld [vmem:[%s3238_s2 + $0x10] sm:$0xff] }
 0x169   : > { %v791_v35 = vmul.f32 %v787_v28, %v787_v28 }
 0x16b   : > { %795 = vadd.xlane.f32.xlu0 %v791_v35 }
 0x16c   : > { %v771_v49 = vpop.xlane.xlu2 %770 }
 0x16d   : > { %v784_v50 = vmul.f32 %v2927_v52, %v771_v49 }
 0x17c   : > { %v773_v42 = vpop.xlane.xlu0 %772 }
 0x17d   : > { %v785_v37 = vmul.f32 %v2927_v52, %v773_v42 }
 0x17f   : > { %v2933_v38 = vsub.f32 %v2870_v24, %v785_v37 }
 0x181   : > { %v793_v39 = vmul.f32 %v2933_v38, %v2933_v38 }
 0x183   : > { %799 = vadd.xlane.f32.xlu2 %v793_v39  ;;  %v2151_v39 = vld [vmem:[%s3238_s2 + $0x8] sm:$0xff] }
 0x188   : > { %v775_v48 = vpop.xlane.xlu0 %774 }
 0x189   : > { %v786_v45 = vmul.f32 %v2927_v52, %v775_v48 }
 0x18b   : > { %v2939_v59 = vsub.f32 %v2896_v20, %v786_v45  ;;  %v2950_v20 = vsub.f32 %v2826_v60, %v784_v50 }
 0x18d   : > { %v794_v8 = vmul.f32 %v2939_v59, %v2939_v59  ;;  %v792_v4 = vmul.f32 %v2950_v20, %v2950_v20 }
 0x18f   : > { %801 = vadd.xlane.f32.xlu0 %v794_v8 }
 0x190   : > { %v1158_v54 = vpop.xlane.xlu0 %1157 }
 0x191   : > { %v1165_v30 = vmul.f32 %v1158_v54, %v2927_v52 }
 0x193   : > { %v2961_v61 = vsub.f32 %v2909_v32, %v1165_v30 }
 0x195   : > { %v1173_v63 = vmul.f32 %v2961_v61, %v2961_v61 }
 0x198   : > { %v1162_v44 = vpop.xlane.xlu1 %1161 }
 0x199   : > { %v1167_v47 = vmul.f32 %v1162_v44, %v2927_v52 }
 0x19b   : > { %v2944_v24 = vsub.f32 %v1155_v7, %v1167_v47  ;;  %v2972_v7 = vperm.slane %v2681_v16, 1  ;;  %v2156_v16 = vld [vmem:[%s3238_s2 + $0x30] sm:$0xff]  ;;  %v2150_v47 = vld [vmem:[%s3238_s2] sm:$0xff] }
 0x19c   : > { %2168 = vmatpush.bf16.msra.mxu2 %v2156_v16  ;;  %1415 = vmatpush.bf16.msra.mxu0 %v2156_v16 }
 0x19d   : > { %v1175_v29 = vmul.f32 %v2944_v24, %v2944_v24 }
 0x19f   : > { %1181 = vadd.xlane.f32.xlu1 %v1175_v29 }
 0x1a0   : > { %v1164_v40 = vpop.xlane.xlu1 %1163  ;;  %2169 = vmatpush.bf16.msra.mxu2 %v2155_v58  ;;  %1416 = vmatpush.bf16.msra.mxu0 %v2155_v58 }
 0x1a1   : > { %v1168_v53 = vmul.f32 %v1164_v40, %v2927_v52 }
 0x1a3   : > { %v2953_v51 = vsub.f32 %v1156_v2, %v1168_v53  ;;  %v2165_v53 = vld [vmem:[%s3238_s2 + $0x78] sm:$0xff] }
 0x1a4   : > { %2170 = vmatpush.bf16.msra.mxu2 %v2154_v55  ;;  %1417 = vmatpush.bf16.msra.mxu0 %v2154_v55 }
 0x1a5   : > { %v1176_v41 = vmul.f32 %v2953_v51, %v2953_v51  ;;  %2175 = vmatpush.bf16.msra.mxu3 %v2165_v53  ;;  %1433 = vmatpush.bf16.msra.mxu1 %v2165_v53 }
 0x1a7   : > { %1183 = vadd.xlane.f32.xlu2 %v1176_v41  ;;  %797 = vadd.xlane.f32.xlu1 %v792_v4 }
 0x1a8   : > { %v1160_v57 = vpop.xlane.xlu1 %1159  ;;  %2171 = vmatpush.bf16.msra.mxu2 %v2153_v13  ;;  %1418 = vmatpush.bf16.msra.mxu0 %v2153_v13 }
 0x1a9   : > { %v1166_v60 = vmul.f32 %v1160_v57, %v2927_v52  ;;  %v2164_v57 = vld [vmem:[%s3238_s2 + $0x70] sm:$0xff] }
 0x1aa   : > { %2176 = vmatpush.bf16.msra.mxu3 %v2164_v57  ;;  %1434 = vmatpush.bf16.msra.mxu1 %v2164_v57 }
 0x1ab   : > { %v2964_v62 = vsub.f32 %v1154_v31, %v1166_v60 }
 0x1ac   : > { %2172 = vmatpush.bf16.msra.mxu2 %v2152_v26  ;;  %1419 = vmatpush.bf16.msra.mxu0 %v2152_v26 }
 0x1ad   : > { %v1174_v27 = vmul.f32 %v2964_v62, %v2964_v62 }
 0x1af   : > { %1177 = vadd.xlane.f32.xlu2 %v1173_v63  ;;  %1179 = vadd.xlane.f32.xlu0 %v1174_v27 }
 0x1b0   : > { %2173 = vmatpush.bf16.msra.mxu2 %v2151_v39  ;;  %1420 = vmatpush.bf16.msra.mxu0 %v2151_v39 }
 0x1b4   : > { %2174 = vmatpush.bf16.msra.mxu2 %v2150_v47  ;;  %1421 = vmatpush.bf16.msra.mxu0 %v2150_v47 }
 0x1de   : > { %v796_v46 = vpop.xlane.xlu0 %795 }
 0x1df   : > { %v803_v1 = vmul.f32 %v796_v46, %v2927_v52 }
 0x1e1   : > { %v807_v0 = vadd.f32 1e-05, %v803_v1 }
 0x1e3   : > { %2243 = vrsqrt.f32 %v807_v0  ;;  %vm817_vm2 = vweird.f32 %v807_v0 }
 0x1e9   : > { %v2244_v34 = vpop.eup %2243 }
 0x1ea   : > { %v812_v32 = vmul.f32 %v2244_v34, %v807_v0  ;;  %vm818_vm1 = vweird.f32 %v2244_v34 }
 0x1eb   : > { %vm819_vm3 = vmor %vm817_vm2, %vm818_vm1 }
 0x1ec   : > { %v813_v14 = vmul.f32 %v2244_v34, %v812_v32 }
 0x1ee   : > { %v814_v17 = vmul.f32 0.5, %v813_v14 }
 0x1f0   : > { %v815_v6 = vsub.f32 1.5, %v814_v17 }
 0x1f2   : > { %v816_v56 = vmul.f32 %v2244_v34, %v815_v6 }
 0x1f4   : > { %v820_v9 = vsel %vm819_vm3, %v2244_v34, %v816_v56 }
 0x1f5   : > { %v851_v5 = vmul.f32 %v820_v9, %v787_v28  ;;  %v2162_v9 = vld [vmem:[%s3238_s2 + $0x60] sm:$0xff] }
 0x1f6   : > { %v800_v22 = vpop.xlane.xlu2 %799 }
 0x1f7   : > { %v856_v10 = vmul.f32 %v2972_v7, %v851_v5  ;;  %v805_v19 = vmul.f32 %v800_v22, %v2927_v52 }
 0x1f9   : > { %v861_v12 = vadd.f32 %v2975_v36, %v856_v10  ;;  %v809_v2 = vadd.f32 1e-05, %v805_v19 }
 0x1fb   : > { %v1245_v15 = vpack.c.bf16 %v861_v12, %v861_v12  ;;  %2245 = vrsqrt.f32 %v809_v2  ;;  %vm837_vm5 = vweird.f32 %v809_v2 }
 0x1fd   : > { %1249 = vst [vmem:[#allocation2] sm:$0xf] %v1245_v15  ;;  %v2161_v15 = vld [vmem:[%s3238_s2 + $0x58] sm:$0xff] }
 0x201   : > { %v2246_v21 = vpop.eup %2245 }
 0x202   : > { %v832_v31 = vmul.f32 %v2246_v21, %v809_v2  ;;  %v802_v33 = vpop.xlane.xlu0 %801  ;;  %vm838_vm4 = vweird.f32 %v2246_v21 }
 0x203   : > { %v806_v11 = vmul.f32 %v802_v33, %v2927_v52  ;;  %vm839_vm6 = vmor %vm837_vm5, %vm838_vm4  ;;  %v2160_v33 = vld [vmem:[%s3238_s2 + $0x50] sm:$0xff] }
 0x204   : > { %v833_v43 = vmul.f32 %v2246_v21, %v832_v31 }
 0x205   : > { %v810_v23 = vadd.f32 1e-05, %v806_v11 }
 0x206   : > { %v834_v25 = vmul.f32 0.5, %v833_v43 }
 0x207   : > { %2247 = vrsqrt.f32 %v810_v23  ;;  %vm847_vm8 = vweird.f32 %v810_v23 }
 0x208   : > { %v835_v3 = vsub.f32 1.5, %v834_v25 }
 0x20a   : > { %v836_v28 = vmul.f32 %v2246_v21, %v835_v3 }
 0x20c   : > { %v840_v35 = vsel %vm839_vm6, %v2246_v21, %v836_v28 }
 0x20d   : > { %v2248_v42 = vpop.eup %2247  ;;  %v853_v37 = vmul.f32 %v840_v35, %v2933_v38 }
 0x20e   : > { %v842_v48 = vmul.f32 %v2248_v42, %v810_v23  ;;  %vm848_vm7 = vweird.f32 %v2248_v42 }
 0x20f   : > { %v858_v45 = vmul.f32 %v2972_v7, %v853_v37  ;;  %vm849_vm9 = vmor %vm847_vm8, %vm848_vm7 }
 0x210   : > { %v843_v8 = vmul.f32 %v2248_v42, %v842_v48 }
 0x211   : > { %v863_v44 = vadd.f32 %v2975_v36, %v858_v45 }
 0x212   : > { %v844_v49 = vmul.f32 0.5, %v843_v8  ;;  %v1182_v29 = vpop.xlane.xlu1 %1181 }
 0x213   : > { %v1247_v50 = vpack.c.bf16 %v863_v44, %v863_v44  ;;  %v1187_v40 = vmul.f32 %v1182_v29, %v2927_v52 }
 0x214   : > { %v845_v38 = vsub.f32 1.5, %v844_v49 }
 0x215   : > { %1251 = vst [vmem:[#allocation2 + $0x10] sm:$0xf] %v1247_v50  ;;  %v1191_v30 = vadd.f32 1e-05, %v1187_v40  ;;  %v2158_v50 = vld [vmem:[%s3238_s2 + $0x40] sm:$0xff] }
 0x216   : > { %v846_v54 = vmul.f32 %v2248_v42, %v845_v38 }
 0x217   : > { %2249 = vrsqrt.f32 %v1191_v30  ;;  %vm1219_vm11 = vweird.f32 %v1191_v30 }
 0x218   : > { %v850_v41 = vsel %vm849_vm9, %v2248_v42, %v846_v54  ;;  %v2159_v42 = vld [vmem:[%s3238_s2 + $0x48] sm:$0xff] }
 0x219   : > { %v854_v4 = vmul.f32 %v850_v41, %v2939_v59  ;;  %v2163_v59 = vld [vmem:[%s3238_s2 + $0x68] sm:$0xff] }
 0x21a   : > { %v798_v63 = vpop.xlane.xlu1 %797  ;;  %v1184_v27 = vpop.xlane.xlu2 %1183  ;;  %2177 = vmatpush.bf16.msra.mxu3 %v2163_v59  ;;  %1435 = vmatpush.bf16.msra.mxu1 %v2163_v59 }
 0x21b   : > { %v859_v60 = vmul.f32 %v2972_v7, %v854_v4  ;;  %v804_v46 = vmul.f32 %v798_v63, %v2927_v52  ;;  %v1188_v1 = vmul.f32 %v1184_v27, %v2927_v52 }
 0x21c   : > { %v2018_v25 = vld [vmem:[#allocation2 + $0x10] sm:$0xf] }
 0x21d   : > { %v864_v0 = vadd.f32 %v2975_v36, %v859_v60  ;;  %v2250_v34 = vpop.eup %2249  ;;  %v3023_v32 = vadd.f32 1e-05, %v804_v46  ;;  %v3025_v14 = vadd.f32 1e-05, %v1188_v1 }
 0x21e   : > { %v1214_v6 = vmul.f32 %v2250_v34, %v1191_v30  ;;  %2178 = vmatpush.bf16.msra.mxu3 %v2162_v9  ;;  %1436 = vmatpush.bf16.msra.mxu1 %v2162_v9  ;;  %vm1220_vm10 = vweird.f32 %v2250_v34 }
 0x21f   : > { %v1248_v17 = vpack.c.bf16 %v864_v0, %v864_v0  ;;  %2251 = vrsqrt.f32 %v3023_v32  ;;  %vm1221_vm12 = vmor %vm1219_vm11, %vm1220_vm10  ;;  %vm827_vm15 = vweird.f32 %v3023_v32  ;;  %vm1229_vm1 = vweird.f32 %v3025_v14 }
 0x220   : > { %v1215_v56 = vmul.f32 %v2250_v34, %v1214_v6  ;;  %2253 = vrsqrt.f32 %v3025_v14 }
 0x221   : > { %1252 = vst [vmem:[#allocation2 + $0x18] sm:$0xf] %v1248_v17 }
 0x222   : > { %v1216_v5 = vmul.f32 0.5, %v1215_v56  ;;  %v1180_v10 = vpop.xlane.xlu0 %1179  ;;  %v1178_v12 = vpop.xlane.xlu2 %1177  ;;  %2179 = vmatpush.bf16.msra.mxu3 %v2161_v15  ;;  %1437 = vmatpush.bf16.msra.mxu1 %v2161_v15 }
 0x223   : > { %v1186_v18 = vmul.f32 %v1180_v10, %v2927_v52  ;;  %v1185_v22 = vmul.f32 %v1178_v12, %v2927_v52 }
 0x224   : > { %v1217_v19 = vsub.f32 1.5, %v1216_v5 }
 0x225   : > { %v2252_v2 = vpop.eup %2251  ;;  %v3037_v16 = vadd.f32 1e-05, %v1186_v18  ;;  %v3039_v58 = vadd.f32 1e-05, %v1185_v22 }
 0x226   : > { %v2254_v21 = vpop.eup %2253  ;;  %v1218_v55 = vmul.f32 %v2250_v34, %v1217_v19  ;;  %v822_v31 = vmul.f32 %v2252_v2, %v3023_v32  ;;  %2180 = vmatpush.bf16.msra.mxu3 %v2160_v33  ;;  %1438 = vmatpush.bf16.msra.mxu1 %v2160_v33  ;;  %vm828_vm13 = vweird.f32 %v2252_v2  ;;  %v2010_v19 = vld [vmem:[#allocation2] sm:$0xf] }
 0x227   : > { %v1224_v11 = vmul.f32 %v2254_v21, %v3025_v14  ;;  %2255 = vrsqrt.f32 %v3037_v16  ;;  %vm1230_vm14 = vweird.f32 %v2254_v21  ;;  %vm829_vm0 = vmor %vm827_vm15, %vm828_vm13  ;;  %vm1209_vm5 = vweird.f32 %v3037_v16 }
 0x228   : > { %v2149_v43 = vld [vmem:[#allocation2 + $0x14] sm:$0xf0]  ;;  %v1222_v23 = vsel %vm1221_vm12, %v2250_v34, %v1218_v55  ;;  %v823_v13 = vmul.f32 %v2252_v2, %v822_v31  ;;  %2257 = vrsqrt.f32 %v3039_v58  ;;  %vm1231_vm2 = vmor %vm1229_vm1, %vm1230_vm14  ;;  %vm1199_vm7 = vweird.f32 %v3039_v58 }
 0x229   : > { %v1235_v3 = vmul.f32 %v1222_v23, %v2944_v24  ;;  %v1225_v26 = vmul.f32 %v2254_v21, %v1224_v11  ;;  %v2019_v28 = vor.u32 %v2149_v43, %v2018_v25 }
 0x22a   : > { %v824_v35 = vmul.f32 0.5, %v823_v13  ;;  %2181 = vmatpush.bf16.msra.mxu3 %v2159_v42  ;;  %1439 = vmatpush.bf16.msra.mxu1 %v2159_v42 }
 0x22b   : > { %v1239_v37 = vmul.f32 %v1235_v3, %v2972_v7  ;;  %v1226_v39 = vmul.f32 0.5, %v1225_v26  ;;  %1427 = vmatmul.bf16.vlgmr.msra.gmra.mxu2 %v2019_v28 }
 0x22c   : > { %v825_v48 = vsub.f32 1.5, %v824_v35 }
 0x22d   : > { %v2256_v45 = vpop.eup %2255  ;;  %v1243_v8 = vadd.f32 %v1239_v37, %v2975_v36  ;;  %v1227_v44 = vsub.f32 1.5, %v1226_v39 }
 0x22e   : > { %v2258_v24 = vpop.eup %2257  ;;  %v826_v47 = vmul.f32 %v2252_v2, %v825_v48  ;;  %v1204_v49 = vmul.f32 %v2256_v45, %v3037_v16  ;;  %2182 = vmatpush.bf16.msra.mxu3 %v2158_v50  ;;  %1440 = vmatpush.bf16.msra.mxu1 %v2158_v50  ;;  %vm1210_vm3 = vweird.f32 %v2256_v45 }
 0x22f   : > { %v1255_v29 = vpack.c.bf16 %v1243_v8, %v1243_v8  ;;  %v1228_v38 = vmul.f32 %v2254_v21, %v1227_v44  ;;  %v1194_v40 = vmul.f32 %v2258_v24, %v3039_v58  ;;  %vm1200_vm4 = vweird.f32 %v2258_v24  ;;  %vm1211_vm6 = vmor %vm1209_vm5, %vm1210_vm3 }
 0x230   : > { %v830_v53 = vsel %vm829_vm0, %v2252_v2, %v826_v47  ;;  %v1205_v54 = vmul.f32 %v2256_v45, %v1204_v49  ;;  %vm1201_vm8 = vmor %vm1199_vm7, %vm1200_vm4 }
 0x231   : > { %1259 = vst [vmem:[#allocation2 + $0x14] sm:$0xf] %v1255_v29  ;;  %v852_v30 = vmul.f32 %v830_v53, %v2950_v20  ;;  %v1232_v41 = vsel %vm1231_vm2, %v2254_v21, %v1228_v38  ;;  %v1195_v4 = vmul.f32 %v2258_v24, %v1194_v40 }
 0x232   : > { %v1236_v57 = vmul.f32 %v1232_v41, %v2953_v51  ;;  %v1206_v60 = vmul.f32 0.5, %v1205_v54 }
 0x233   : > { %v857_v63 = vmul.f32 %v2972_v7, %v852_v30  ;;  %v1196_v27 = vmul.f32 0.5, %v1195_v4 }
 0x234   : > { %v1240_v46 = vmul.f32 %v1236_v57, %v2972_v7  ;;  %v1207_v1 = vsub.f32 1.5, %v1206_v60 }
 0x235   : > { %v862_v0 = vadd.f32 %v2975_v36, %v857_v63  ;;  %v1197_v59 = vsub.f32 1.5, %v1196_v27 }
 0x236   : > { %v1244_v20 = vadd.f32 %v1240_v46, %v2975_v36  ;;  %v1208_v34 = vmul.f32 %v2256_v45, %v1207_v1 }
 0x237   : > { %v1246_v51 = vpack.c.bf16 %v862_v0, %v862_v0  ;;  %v1198_v32 = vmul.f32 %v2258_v24, %v1197_v59 }
 0x238   : > { %v1256_v14 = vpack.c.bf16 %v1244_v20, %v1244_v20  ;;  %v1212_v17 = vsel %vm1211_vm6, %v2256_v45, %v1208_v34  ;;  %v2148_v58 = vld [vmem:[#allocation2 + $0x14] sm:$0xf] }
 0x239   : > { %1250 = vst [vmem:[#allocation2 + $0x8] sm:$0xf] %v1246_v51  ;;  %v1234_v6 = vmul.f32 %v1212_v17, %v2964_v62  ;;  %v1202_v56 = vsel %vm1201_vm8, %v2258_v24, %v1198_v32 }
 0x23a   : > { %1260 = vst [vmem:[#allocation2 + $0x1c] sm:$0xf] %v1256_v14  ;;  %v1233_v9 = vmul.f32 %v1202_v56, %v2961_v61 }
 0x23b   : > { %v1238_v5 = vmul.f32 %v1234_v6, %v2972_v7 }
 0x23c   : > { %v1237_v10 = vmul.f32 %v1233_v9, %v2972_v7 }
 0x23d   : > { %v1242_v12 = vadd.f32 %v1238_v5, %v2975_v36 }
 0x23e   : > { %v1241_v15 = vadd.f32 %v1237_v10, %v2975_v36  ;;  %v3078_v36 = vld [vmem:[%s3239_s3] sm:$0xff] }
 0x23f   : > { %v1254_v18 = vpack.c.bf16 %v1242_v12, %v1242_v12  ;;  %v1297_v33 = vperm.slane %v3078_v36, 3 }
 0x240   : > { %v1253_v22 = vpack.c.bf16 %v1241_v15, %v1241_v15  ;;  %v2147_v2 = vld [vmem:[#allocation2 + $0x4] sm:$0xf0] }
 0x241   : > { %1258 = vst [vmem:[#allocation2 + $0xc] sm:$0xf] %v1254_v18  ;;  %v2011_v16 = vor.u32 %v2147_v2, %v2010_v19  ;;  %v2020_v62 = vld [vmem:[#allocation2 + $0x18] sm:$0xf0] }
 0x242   : > { %1257 = vst [vmem:[#allocation2 + $0x4] sm:$0xf] %v1253_v22  ;;  %v2023_v21 = vor.u32 %v2148_v58, %v2020_v62 }
 0x243   : > { %1422 = vmatmul.bf16.vlgmr.msra.gmra.mxu0 %v2011_v16 }
 0x244   : > { %1446 = vmatmul.bf16.vlgmr.msra.gmra.mxu3 %v2023_v21 }
 0x248   : > { %v2012_v61 = vld [vmem:[#allocation2 + $0x8] sm:$0xf0] }
 0x249   : > { %v2146_v55 = vld [vmem:[#allocation2 + $0x4] sm:$0xf] }
 0x24a   : > { %v2015_v31 = vor.u32 %v2146_v55, %v2012_v61 }
 0x24c   : > { %1441 = vmatmul.bf16.vlgmr.msra.gmra.mxu1 %v2015_v31 }
 0x2ae   : > { %v1428_v7 = vpop.f32.mrf.mxu2 }
 0x2af   : > { %v1429_v43 = vadd.f32 %v1428_v7, %v1297_v33 }
 0x2b6   : > { %v1430_v35 = vpop.f32.mrf.mxu2 }
 0x2b7   : > { %v1431_v48 = vadd.f32 %v1430_v35, %v1297_v33 }
 0x2c0   : > { %v1423_v11 = vpop.f32.mrf.mxu0 }
 0x2c1   : > { %v1424_v13 = vadd.f32 %v1423_v11, %v1297_v33 }
 0x2c7   : > { %v1447_v23 = vpop.f32.mrf.mxu3 }
 0x2c8   : > { %v3081_v25 = vadd.f32 %v1447_v23, %v1429_v43  ;;  %v1425_v37 = vpop.f32.mrf.mxu0 }
 0x2c9   : > { %v1442_v3 = vpop.f32.mrf.mxu1  ;;  %v1426_v44 = vadd.f32 %v1425_v37, %v1297_v33 }
 0x2ca   : > { %v3084_v26 = vmul.f32 0.70710677, %v3081_v25  ;;  %v3086_v28 = vadd.f32 %v1442_v3, %v1424_v13 }
 0x2cc   : > { %v1540_v42 = vmul.f32 %v3084_v26, %v3084_v26  ;;  %v3091_v39 = vmul.f32 0.70710677, %v3086_v28 }
 0x2ce   : > { %v3093_v45 = vmin.f32 %v1540_v42, 16.0  ;;  %v1460_v8 = vmul.f32 %v3091_v39, %v3091_v39 }
 0x2cf   : > { %v1449_v24 = vpop.f32.mrf.mxu3 }
 0x2d0   : > { %v1542_v47 = vmul.f32 2.1237322e-06, %v3093_v45  ;;  %v3098_v49 = vmin.f32 %v1460_v8, 16.0  ;;  %v3100_v50 = vadd.f32 %v1449_v24, %v1431_v48  ;;  %v1553_v29 = vmul.f32 3.8918573e-05, %v3093_v45 }
 0x2d1   : > { %v1444_v38 = vpop.f32.mrf.mxu1 }
 0x2d2   : > { %v1543_v40 = vadd.f32 0.00028619796, %v1542_v47  ;;  %v1462_v53 = vmul.f32 2.1237322e-06, %v3098_v49  ;;  %v3104_v54 = vadd.f32 %v1444_v38, %v1426_v44  ;;  %v3107_v30 = vmul.f32 0.70710677, %v3100_v50 }
 0x2d3   : > { %v1554_v41 = vadd.f32 0.001143296, %v1553_v29  ;;  %v1473_v4 = vmul.f32 3.8918573e-05, %v3098_v49 }
 0x2d4   : > { %v1544_v57 = vmul.f32 %v1543_v40, %v3093_v45  ;;  %v1463_v60 = vadd.f32 0.00028619796, %v1462_v53  ;;  %v3112_v63 = vmul.f32 0.70710677, %v3104_v54  ;;  %v1580_v27 = vmul.f32 %v3107_v30, %v3107_v30 }
 0x2d5   : > { %v1555_v46 = vmul.f32 %v1554_v41, %v3093_v45  ;;  %v1474_v1 = vadd.f32 0.001143296, %v1473_v4 }
 0x2d6   : > { %v1545_v0 = vadd.f32 0.0036580483, %v1544_v57  ;;  %v1464_v59 = vmul.f32 %v1463_v60, %v3098_v49  ;;  %v1500_v20 = vmul.f32 %v3112_v63, %v3112_v63  ;;  %v3120_v34 = vmin.f32 %v1580_v27, 16.0 }
 0x2d7   : > { %v1556_v51 = vadd.f32 0.014752088, %v1555_v46  ;;  %v1475_v32 = vmul.f32 %v1474_v1, %v3098_v49 }
 0x2d8   : > { %v1465_v14 = vadd.f32 0.0036580483, %v1464_v59  ;;  %v3123_v17 = vmin.f32 %v1500_v20, 16.0  ;;  %v1582_v6 = vmul.f32 2.1237322e-06, %v3120_v34  ;;  %v1546_v10 = vmul.f32 %v1545_v0, %v3093_v45 }
 0x2d9   : > { %v1557_v56 = vmul.f32 %v1556_v51, %v3093_v45  ;;  %v1476_v9 = vadd.f32 0.014752088, %v1475_v32  ;;  %v1593_v5 = vmul.f32 3.8918573e-05, %v3120_v34 }
 0x2da   : > { %v1502_v12 = vmul.f32 2.1237322e-06, %v3123_v17  ;;  %v1513_v15 = vmul.f32 3.8918573e-05, %v3123_v17  ;;  %v1583_v18 = vadd.f32 0.00028619796, %v1582_v6  ;;  %v1466_v16 = vmul.f32 %v1465_v14, %v3098_v49 }
 0x2db   : > { %v1558_v22 = vadd.f32 0.112945676, %v1557_v56  ;;  %v1477_v19 = vmul.f32 %v1476_v9, %v3098_v49  ;;  %v1594_v2 = vadd.f32 0.001143296, %v1593_v5  ;;  %v1547_v7 = vadd.f32 0.05243302, %v1546_v10 }
 0x2dc   : > { %v1503_v58 = vadd.f32 0.00028619796, %v1502_v12  ;;  %v1514_v62 = vadd.f32 0.001143296, %v1513_v15  ;;  %v1584_v21 = vmul.f32 %v1583_v18, %v3120_v34  ;;  %v1467_v37 = vadd.f32 0.05243302, %v1466_v16 }
 0x2dd   : > { %v1559_v61 = vmul.f32 %v1558_v22, %v3093_v45  ;;  %v1478_v55 = vadd.f32 0.112945676, %v1477_v19  ;;  %v1595_v31 = vmul.f32 %v1594_v2, %v3120_v34  ;;  %v1548_v24 = vmul.f32 %v1547_v7, %v3093_v45 }
 0x2de   : > { %v1504_v33 = vmul.f32 %v1503_v58, %v3123_v17  ;;  %v1515_v11 = vmul.f32 %v1514_v62, %v3123_v17  ;;  %v1585_v43 = vadd.f32 0.0036580483, %v1584_v21  ;;  %v1468_v57 = vmul.f32 %v1467_v37, %v3098_v49 }
 0x2df   : > { %v1560_v23 = vadd.f32 0.4994258, %v1559_v61  ;;  %v1479_v13 = vmul.f32 %v1478_v55, %v3098_v49  ;;  %v1596_v3 = vadd.f32 0.014752088, %v1595_v31  ;;  %v1549_v60 = vadd.f32 0.18741608, %v1548_v24 }
 0x2e0   : > { %v1505_v35 = vadd.f32 0.0036580483, %v1504_v33  ;;  %v1516_v42 = vadd.f32 0.014752088, %v1515_v11  ;;  %v1586_v29 = vmul.f32 %v1585_v43, %v3120_v34  ;;  %v1469_v20 = vadd.f32 0.18741608, %v1468_v57 }
 0x2e1   : > { %v1561_v48 = vmul.f32 %v1560_v23, %v3093_v45  ;;  %v1480_v8 = vadd.f32 0.4994258, %v1479_v13  ;;  %v1597_v44 = vmul.f32 %v1596_v3, %v3120_v34  ;;  %v1550_v32 = vmul.f32 %v1549_v60, %v3093_v45 }
 0x2e2   : > { %v1517_v47 = vmul.f32 %v1516_v42, %v3123_v17  ;;  %v1506_v41 = vmul.f32 %v1505_v35, %v3123_v17  ;;  %v1587_v46 = vadd.f32 0.05243302, %v1586_v29  ;;  %v1470_v15 = vmul.f32 %v1469_v20, %v3098_v49 }
 0x2e3   : > { %v1562_v38 = vadd.f32 1.0, %v1561_v48  ;;  %v1481_v40 = vmul.f32 %v1480_v8, %v3098_v49  ;;  %v1598_v53 = vadd.f32 0.112945676, %v1597_v44  ;;  %v1551_v19 = vadd.f32 1.1283791, %v1550_v32 }
 0x2e4   : > { %v1518_v4 = vadd.f32 0.112945676, %v1517_v47  ;;  %v1507_v59 = vadd.f32 0.05243302, %v1506_v41  ;;  %v1588_v56 = vmul.f32 %v1587_v46, %v3120_v34  ;;  %v1454_v49 = vmul.f32 0.5, %v3081_v25 }
 0x2e5   : > { %2259 = vrcp.f32 %v1562_v38  ;;  %v1482_v27 = vadd.f32 1.0, %v1481_v40  ;;  %v1599_v0 = vmul.f32 %v1598_v53, %v3120_v34  ;;  %v1574_v16 = vand.u32 2147483648, %v1562_v38 }
 0x2e6   : > { %v1519_v1 = vmul.f32 %v1518_v4, %v3123_v17  ;;  %v1508_v5 = vmul.f32 %v1507_v59, %v3123_v17  ;;  %v1589_v58 = vadd.f32 0.18741608, %v1588_v56  ;;  %v1572_v62 = vand.u32 2147483647, %v1562_v38 }
 0x2e7   : > { %2261 = vrcp.f32 %v1482_v27  ;;  %v1600_v14 = vadd.f32 0.4994258, %v1599_v0  ;;  %v1471_v31 = vadd.f32 1.1283791, %v1470_v15  ;;  %vm1568_vm10 = vweird.f32 %v1562_v38 }
 0x2e8   : > { %v1520_v51 = vadd.f32 0.4994258, %v1519_v1  ;;  %v1509_v61 = vadd.f32 0.18741608, %v1508_v5  ;;  %v1575_v11 = vor.u32 1.1754944e-38, %v1574_v16  ;;  %v1494_v43 = vand.u32 2147483648, %v1482_v27 }
 0x2e9   : > { %v1601_v12 = vmul.f32 %v1600_v14, %v3120_v34  ;;  %v1590_v23 = vmul.f32 %v1589_v58, %v3120_v34  ;;  %v1492_v3 = vand.u32 2147483647, %v1482_v27  ;;  %v1552_v35 = vmul.f32 %v1551_v19, %v3084_v26 }
 0x2ea   : > { %v1521_v9 = vmul.f32 %v1520_v51, %v3123_v17  ;;  %v1510_v42 = vmul.f32 %v1509_v61, %v3123_v17  ;;  %vm1573_vm13 = vcmp.eq.f32.partialorder %v1572_v62, 8.507059e+37  ;;  %v1452_v25 = vmul.f32 0.5, %v3086_v28 }
 0x2eb   : > { %v2260_v6 = vpop.eup %2259  ;;  %v3157_v45 = vadd.f32 1.0, %v1601_v12  ;;  %vm1488_vm14 = vweird.f32 %v1482_v27  ;;  %v1472_v47 = vmul.f32 %v1471_v31, %v3091_v39  ;;  %v1495_v29 = vor.u32 1.1754944e-38, %v1494_v43 }
 0x2ec   : > { %v1564_v10 = vmul.f32 %v2260_v6, %v1562_v38  ;;  %v3155_v18 = vadd.f32 1.0, %v1521_v9  ;;  %vm1569_vm9 = vweird.f32 %v2260_v6  ;;  %v1591_v40 = vadd.f32 1.1283791, %v1590_v23 }
 0x2ed   : > { %v2262_v22 = vpop.eup %2261  ;;  %vm1570_vm11 = vmor %vm1568_vm10, %vm1569_vm9  ;;  %vm1493_vm0 = vcmp.eq.f32.partialorder %v1492_v3, 8.507059e+37  ;;  %v1511_v53 = vadd.f32 1.1283791, %v1510_v42  ;;  %v1614_v0 = vand.u32 2147483648, %v3157_v45  ;;  %v1612_v51 = vand.u32 2147483647, %v3157_v45 }
 0x2ee   : > { %v1565_v2 = vsub.f32 1.0, %v1564_v10  ;;  %v1484_v21 = vmul.f32 %v2262_v22, %v1482_v27  ;;  %2263 = vrcp.f32 %v3155_v18  ;;  %vm1489_vm12 = vweird.f32 %v2262_v22 }
 0x2ef   : > { %2265 = vrcp.f32 %v3157_v45  ;;  %vm1490_vm15 = vmor %vm1488_vm14, %vm1489_vm12  ;;  %v1532_v60 = vand.u32 2147483647, %v3155_v18  ;;  %v1534_v27 = vand.u32 2147483648, %v3155_v18  ;;  %v1592_v32 = vmul.f32 %v1591_v40, %v3107_v30 }
 0x2f0   : > { %v1566_v55 = vmul.f32 %v2260_v6, %v1565_v2  ;;  %v1485_v7 = vsub.f32 1.0, %v1484_v21  ;;  %vm1528_vm3 = vweird.f32 %v3155_v18  ;;  %vm1608_vm5 = vweird.f32 %v3157_v45 }
 0x2f1   : > { %v1535_v9 = vor.u32 1.1754944e-38, %v1534_v27  ;;  %v1512_v10 = vmul.f32 %v1511_v53, %v3112_v63  ;;  %vm1533_vm6 = vcmp.eq.f32.partialorder %v1532_v60, 8.507059e+37  ;;  %v1615_v15 = vor.u32 1.1754944e-38, %v1614_v0 }
 0x2f2   : > { %v1567_v33 = vadd.f32 %v2260_v6, %v1566_v55  ;;  %v1486_v13 = vmul.f32 %v2262_v22, %v1485_v7  ;;  %vm1613_vm8 = vcmp.eq.f32.partialorder %v1612_v51, 8.507059e+37  ;;  %v1455_v63 = vmul.f32 0.5, %v3100_v50 }
 0x2f4   : > { %v1571_v37 = vsel %vm1570_vm11, %v2260_v6, %v1567_v33  ;;  %v2264_v48 = vpop.eup %2263  ;;  %v1487_v44 = vadd.f32 %v2262_v22, %v1486_v13 }
 0x2f5   : > { %v1576_v8 = vsel %vm1573_vm13, %v1575_v11, %v1571_v37  ;;  %v2266_v24 = vpop.eup %2265  ;;  %v1524_v38 = vmul.f32 %v2264_v48, %v3155_v18  ;;  %vm1529_vm1 = vweird.f32 %v2264_v48 }
 0x2f6   : > { %v1577_v34 = vmul.f32 %v1576_v8, %v1552_v35  ;;  %v1491_v26 = vsel %vm1490_vm15, %v2262_v22, %v1487_v44  ;;  %v1604_v17 = vmul.f32 %v2266_v24, %v3157_v45  ;;  %vm1609_vm2 = vweird.f32 %v2266_v24  ;;  %vm1530_vm4 = vmor %vm1528_vm3, %vm1529_vm1 }
 0x2f7   : > { %v1496_v4 = vsel %vm1493_vm0, %v1495_v29, %v1491_v26  ;;  %v1525_v28 = vsub.f32 1.0, %v1524_v38  ;;  %vm1610_vm7 = vmor %vm1608_vm5, %vm1609_vm2  ;;  %v1453_v45 = vmul.f32 0.5, %v3104_v54 }
 0x2f8   : > { %v2090_v41 = vclamps-f32 %v1577_v34, 1.0  ;;  %v1497_v57 = vmul.f32 %v1496_v4, %v1472_v47  ;;  %v1605_v39 = vsub.f32 1.0, %v1604_v17 }
 0x2f9   : > { %v1526_v1 = vmul.f32 %v2264_v48, %v1525_v28 }
 0x2fa   : > { %v1622_v46 = vadd.f32 1.0, %v2090_v41  ;;  %v2088_v59 = vclamps-f32 %v1497_v57, 1.0  ;;  %v1606_v20 = vmul.f32 %v2266_v24, %v1605_v39 }
 0x2fb   : > { %v1527_v6 = vadd.f32 %v2264_v48, %v1526_v1 }
 0x2fc   : > { %v1626_v14 = vmul.f32 %v1622_v46, %v1454_v49  ;;  %v1620_v56 = vadd.f32 1.0, %v2088_v59  ;;  %v1607_v5 = vadd.f32 %v2266_v24, %v1606_v20 }
 0x2fd   : > { %v1531_v12 = vsel %vm1530_vm4, %v2264_v48, %v1527_v6  ;;  %v1713_v6 = vperm.slane %v3078_v36, 5 }
 0x2fe   : > { %1632 = vadd.xlane.f32.xlu0 %v1626_v14  ;;  %v1624_v22 = vmul.f32 %v1620_v56, %v1452_v25  ;;  %v1536_v30 = vsel %vm1533_vm6, %v1535_v9, %v1531_v12  ;;  %v1611_v19 = vsel %vm1610_vm7, %v2266_v24, %v1607_v5 }
 0x2ff   : > { %v1537_v2 = vmul.f32 %v1536_v30, %v1512_v10  ;;  %v1616_v18 = vsel %vm1613_vm8, %v1615_v15, %v1611_v19 }
 0x300   : > { %1628 = vadd.xlane.f32.xlu1 %v1624_v22  ;;  %v1617_v16 = vmul.f32 %v1616_v18, %v1592_v32  ;;  %v1708_v32 = vperm.slane %v3078_v36, 4 }
 0x301   : > { %v2089_v58 = vclamps-f32 %v1537_v2, 1.0 }
 0x302   : > { %v2091_v62 = vclamps-f32 %v1617_v16, 1.0 }
 0x303   : > { %v1621_v21 = vadd.f32 1.0, %v2089_v58 }
 0x304   : > { %v1623_v61 = vadd.f32 1.0, %v2091_v62 }
 0x305   : > { %v1625_v55 = vmul.f32 %v1621_v21, %v1453_v45 }
 0x306   : > { %v1627_v49 = vmul.f32 %v1623_v61, %v1455_v63 }
 0x307   : > { %1630 = vadd.xlane.f32.xlu2 %v1625_v55 }
 0x308   : > { %1634 = vadd.xlane.f32.xlu1 %v1627_v49 }
 0x371   : > { %v1633_v31 = vpop.xlane.xlu0 %1632 }
 0x372   : > { %v1638_v7 = vmul.f32 %v1633_v31, %v2927_v52 }
 0x373   : > { %v1629_v11 = vpop.xlane.xlu1 %1628 }
 0x374   : > { %v1642_v33 = vsub.f32 %v1626_v14, %v1638_v7  ;;  %v1636_v43 = vmul.f32 %v1629_v11, %v2927_v52 }
 0x376   : > { %v1646_v23 = vmul.f32 %v1642_v33, %v1642_v33  ;;  %v1640_v13 = vsub.f32 %v1624_v22, %v1636_v43 }
 0x378   : > { %1652 = vadd.xlane.f32.xlu1 %v1646_v23  ;;  %v1644_v3 = vmul.f32 %v1640_v13, %v1640_v13 }
 0x37a   : > { %1648 = vadd.xlane.f32.xlu2 %v1644_v3  ;;  %v1631_v54 = vpop.xlane.xlu2 %1630 }
 0x37b   : > { %v1637_v50 = vmul.f32 %v1631_v54, %v2927_v52  ;;  %v1635_v35 = vpop.xlane.xlu1 %1634 }
 0x37c   : > { %v1639_v42 = vmul.f32 %v1635_v35, %v2927_v52 }
 0x37d   : > { %v3184_v37 = vsub.f32 %v1625_v55, %v1637_v50 }
 0x37e   : > { %v3186_v48 = vsub.f32 %v1627_v49, %v1639_v42 }
 0x37f   : > { %v1645_v25 = vmul.f32 %v3184_v37, %v3184_v37 }
 0x380   : > { %v1647_v8 = vmul.f32 %v3186_v48, %v3186_v48 }
 0x381   : > { %1650 = vadd.xlane.f32.xlu0 %v1645_v25 }
 0x382   : > { %1654 = vadd.xlane.f32.xlu2 %v1647_v8 }
 0x3eb   : > { %v1653_v44 = vpop.xlane.xlu1 %1652 }
 0x3ec   : > { %v1658_v24 = vmul.f32 %v1653_v44, %v2927_v52 }
 0x3ed   : > { %v1649_v34 = vpop.xlane.xlu2 %1648 }
 0x3ee   : > { %v1662_v47 = vadd.f32 1e-05, %v1658_v24  ;;  %v1656_v29 = vmul.f32 %v1649_v34, %v2927_v52 }
 0x3f0   : > { %2267 = vrsqrt.f32 %v1662_v47  ;;  %v1660_v38 = vadd.f32 1e-05, %v1656_v29  ;;  %vm1690_vm10 = vweird.f32 %v1662_v47 }
 0x3f2   : > { %2269 = vrsqrt.f32 %v1660_v38  ;;  %vm1670_vm13 = vweird.f32 %v1660_v38 }
 0x3f4   : > { %v1651_v40 = vpop.xlane.xlu0 %1650 }
 0x3f5   : > { %v1657_v17 = vmul.f32 %v1651_v40, %v2927_v52  ;;  %v1655_v53 = vpop.xlane.xlu2 %1654 }
 0x3f6   : > { %v2268_v26 = vpop.eup %2267  ;;  %v1659_v4 = vmul.f32 %v1655_v53, %v2927_v52 }
 0x3f7   : > { %v1685_v41 = vmul.f32 %v2268_v26, %v1662_v47  ;;  %v1661_v28 = vadd.f32 1e-05, %v1657_v17  ;;  %vm1691_vm9 = vweird.f32 %v2268_v26 }
 0x3f8   : > { %v2270_v57 = vpop.eup %2269  ;;  %v1663_v27 = vadd.f32 1e-05, %v1659_v4  ;;  %vm1692_vm11 = vmor %vm1690_vm10, %vm1691_vm9 }
 0x3f9   : > { %v1686_v60 = vmul.f32 %v2268_v26, %v1685_v41  ;;  %v1665_v39 = vmul.f32 %v2270_v57, %v1660_v38  ;;  %2271 = vrsqrt.f32 %v1661_v28  ;;  %vm1671_vm12 = vweird.f32 %v2270_v57 }
 0x3fa   : > { %2273 = vrsqrt.f32 %v1663_v27  ;;  %vm1672_vm14 = vmor %vm1670_vm13, %vm1671_vm12  ;;  %vm1680_vm1 = vweird.f32 %v1661_v28  ;;  %vm1700_vm3 = vweird.f32 %v1663_v27 }
 0x3fb   : > { %v1687_v46 = vmul.f32 0.5, %v1686_v60  ;;  %v1666_v1 = vmul.f32 %v2270_v57, %v1665_v39 }
 0x3fd   : > { %v1688_v0 = vsub.f32 1.5, %v1687_v46  ;;  %v1667_v59 = vmul.f32 0.5, %v1666_v1 }
 0x3ff   : > { %v1689_v20 = vmul.f32 %v2268_v26, %v1688_v0  ;;  %v2272_v51 = vpop.eup %2271  ;;  %v1668_v52 = vsub.f32 1.5, %v1667_v59 }
 0x400   : > { %v2274_v14 = vpop.eup %2273  ;;  %v1675_v9 = vmul.f32 %v2272_v51, %v1661_v28  ;;  %vm1681_vm15 = vweird.f32 %v2272_v51 }
 0x401   : > { %v1693_v56 = vsel %vm1692_vm11, %v2268_v26, %v1689_v20  ;;  %v1669_v10 = vmul.f32 %v2270_v57, %v1668_v52  ;;  %v1695_v12 = vmul.f32 %v2274_v14, %v1663_v27  ;;  %vm1701_vm0 = vweird.f32 %v2274_v14  ;;  %vm1682_vm2 = vmor %vm1680_vm1, %vm1681_vm15 }
 0x402   : > { %v1706_v5 = vmul.f32 %v1693_v56, %v1642_v33  ;;  %v1676_v15 = vmul.f32 %v2272_v51, %v1675_v9  ;;  %vm1702_vm4 = vmor %vm1700_vm3, %vm1701_vm0 }
 0x403   : > { %v1673_v30 = vsel %vm1672_vm14, %v2270_v57, %v1669_v10  ;;  %v1696_v19 = vmul.f32 %v2274_v14, %v1695_v12 }
 0x404   : > { %v1711_v22 = vmul.f32 %v1708_v32, %v1706_v5  ;;  %v1704_v2 = vmul.f32 %v1673_v30, %v1640_v13  ;;  %v1677_v18 = vmul.f32 0.5, %v1676_v15 }
 0x405   : > { %v1697_v58 = vmul.f32 0.5, %v1696_v19 }
 0x406   : > { %v1716_v16 = vadd.f32 %v1713_v6, %v1711_v22  ;;  %v1709_v62 = vmul.f32 %v1708_v32, %v1704_v2  ;;  %v1678_v36 = vsub.f32 1.5, %v1677_v18 }
 0x407   : > { %v1698_v45 = vsub.f32 1.5, %v1697_v58 }
 0x408   : > { %1720 = vst [vmem:[%s193_s8 + $0x10] sm:$0xff] %v1716_v16  ;;  %v1714_v21 = vadd.f32 %v1713_v6, %v1709_v62  ;;  %v1679_v63 = vmul.f32 %v2272_v51, %v1678_v36 }
 0x409   : > { %v1699_v61 = vmul.f32 %v2274_v14, %v1698_v45 }
 0x40a   : > { %1718 = vst [vmem:[%s193_s8] sm:$0xff] %v1714_v21  ;;  %v1683_v55 = vsel %vm1682_vm2, %v2272_v51, %v1679_v63 }
 0x40b   : > { %v1705_v49 = vmul.f32 %v1683_v55, %v3184_v37  ;;  %v1703_v31 = vsel %vm1702_vm4, %v2274_v14, %v1699_v61 }
 0x40c   : > { %v1707_v7 = vmul.f32 %v1703_v31, %v3186_v48 }
 0x40d   : > { %v1710_v33 = vmul.f32 %v1708_v32, %v1705_v49 }
 0x40e   : > { %v1712_v11 = vmul.f32 %v1708_v32, %v1707_v7 }
 0x40f   : > { %v1715_v43 = vadd.f32 %v1713_v6, %v1710_v33 }
 0x410   : > { %v1717_v23 = vadd.f32 %v1713_v6, %v1712_v11 }
 0x411   : > { %1719 = vst [vmem:[%s193_s8 + $0x8] sm:$0xff] %v1715_v43 }
 0x412   : > { %1721 = vst [vmem:[%s193_s8 + $0x18] sm:$0xff] %v1717_v23 }
 0x413   : > { %2303 = shalt.err (!%p2300_p3)
}
 0x414   : > { %s2341_s30 = smov 128   ;;  %s2342_s5 = smov 8  }
 0x415   : > { %2183 = dma.vmem_to_hbm [thread:$0]  (%p2406_p5), %s1736_s19, 512, %s1738_s12, %s1723_s13, %s2341_s30, %s2341_s30, %s2342_s5  }
 0x416 PF: > { %p2189_p4 = scmp.ge.s32.totalorder %s2338_s18, 2  ;;  %s1752_s6 = sand.u32 1, %s2326_s15  }
 0x417   : > { %s1753_s7 = scalar_lea.sflag [#allocation4], %s1752_s6 }
 0x418   : > { %p2186_p7 = pnand %p2189_p4, %p2410_p6 }
 0x41a   : > { %p2187_p8 = pneg %p2186_p7 }
 0x41c   : > { %2321 = dma.done.wait (%p2187_p8), %s1753_s7, 512  }
 0x41d   : > { %2323 = vsyncadd (%p2187_p8), %s1753_s7, 4294966784  ;;  %p14_p9 = scmp.ge.s32.totalorder %s2393_s21, 4   ;;  %s3243_s15 = smov %s2330_s16 }
 0x41e   : > { %s3244_s16 = smov %s2334_s17  ;;  %s3245_s17 = smov %s2404_s24 }
 0x41f   : > { %s3246_s18 = smov %s2393_s21  ;;  %16 = sbr.rel (!%p14_p9) target bundleno = 3 (0x3), region = 71 }
 0x424   :  { %1759 = vsyncpa [#allocation4], 1 }
 0x425   :  { %1761 = vsyncpa [#allocation4 + $0x1], 1 }

</bundles_post_ra>
